<compile_context>
chip_gen: v7x
topology: tpu7x:2x2x1
jax: 0.10.0
libtpu: 0.0.40
codegen_flags: <defaults>
</compile_context>

<pallas_src>
import jax
import jax.numpy as jnp
from jax.experimental import pallas as pl
from jax.experimental.pallas import tpu as pltpu


# --------------------------------------------------------------------------
# Model configuration (synthetic surrogate dims; no checkpoint load)
# --------------------------------------------------------------------------
STRIDES = (64, 32, 16, 8)                 # feats[0..3] spatial strides
FEATURE_DIMS = (64, 64, 32, 32)           # synthetic per-stride UNet channel dims
PROJECTION_DIM = 32                       # config['projection_dim']
PROJECTION_DIM_X4 = 64                    # config['projection_dim_x4']
AGG_HIDDEN = 64                           # bottleneck hidden width
N_LEVELS = len(STRIDES)


# --------------------------------------------------------------------------
# The single fused Pallas kernel: (extract lift) + agg MLP (all 4 strides,
# block-diagonal) + deep-fusion finecoder MLP, per stride-8 pixel row.
# --------------------------------------------------------------------------
def _fused_forward_kernel(x_ref, w1_ref, b1_ref, w2_ref, b2_ref,
                          wf1_ref, bf1_ref, wf2_ref, bf2_ref, o_ref):
    # x_ref: (TN, 12) bf16 -- [pool64 | pool32 | pool16 | pool8] channels
    x = x_ref[...]
    # agg hidden, all 4 levels at once (block-diagonal weights): (TN, 256)
    h = jnp.dot(x, w1_ref[...], preferred_element_type=jnp.float32)
    h = jnp.maximum(h + b1_ref[...], 0.0)
    # per-level projection (mix folded into weights): (TN, 128) = concat of 4x32
    p = jnp.dot(h.astype(jnp.bfloat16), w2_ref[...],
                preferred_element_type=jnp.float32) + b2_ref[...]
    # finecoder deep fusion MLP: (TN, 64)
    hf = jnp.dot(p.astype(jnp.bfloat16), wf1_ref[...],
                 preferred_element_type=jnp.float32)
    hf = jnp.maximum(hf + bf1_ref[...], 0.0)
    y = jnp.dot(hf.astype(jnp.bfloat16), wf2_ref[...],
                preferred_element_type=jnp.float32)
    y = jnp.maximum(y + bf2_ref[...], 0.0)
    o_ref[...] = y.astype(o_ref.dtype)


def fused_network_pallas(x, fp, *, tn=512):
    """x: (N, 12) bf16 pooled features.  Returns (N, PROJECTION_DIM_X4) f32."""
    n, cin = x.shape
    cout = fp["wf2"].shape[1]
    if n <= tn:
        tn = n                                    # single full-extent block
    n_pad = pl.cdiv(n, tn) * tn
    if n_pad != n:                                # masked tail via host padding
        x = jnp.pad(x, ((0, n_pad - n), (0, 0)))
    grid = (n_pad // tn,)

    def wspec(shape):
        return pl.BlockSpec(shape, lambda i: (0, 0))

    out = pl.pallas_call(
        _fused_forward_kernel,
        grid=grid,
        in_specs=[
            pl.BlockSpec((tn, cin), lambda i: (i, 0)),
            wspec(fp["w1"].shape), wspec(fp["b1"].shape),
            wspec(fp["w2"].shape), wspec(fp["b2"].shape),
            wspec(fp["wf1"].shape), wspec(fp["bf1"].shape),
            wspec(fp["wf2"].shape), wspec(fp["bf2"].shape),
        ],
        out_specs=pl.BlockSpec((tn, cout), lambda i: (i, 0)),
        out_shape=jax.ShapeDtypeStruct((n_pad, cout), jnp.float32),
        compiler_params=pltpu.CompilerParams(
            dimension_semantics=("parallel",)),
    )(x, fp["w1"], fp["b1"], fp["w2"], fp["b2"],
      fp["wf1"], fp["bf1"], fp["wf2"], fp["bf2"])
    return out[:n] if n_pad != n else out


# --------------------------------------------------------------------------
# Surrogate extractor front-end: hierarchical pooling (image read once).
# --------------------------------------------------------------------------
def _hierarchical_pools(img_nchw):
    b, c, h, w = img_nchw.shape
    x = jnp.transpose(img_nchw, (0, 2, 3, 1)).astype(jnp.float32)    # NHWC
    h8, w8 = h // 8, w // 8
    p8 = x.reshape(b, h8, 8, w8, 8, c).mean(axis=(2, 4))
    p16 = p8.reshape(b, h8 // 2, 2, w8 // 2, 2, c).mean(axis=(2, 4))
    p32 = p16.reshape(b, h8 // 4, 2, w8 // 4, 2, c).mean(axis=(2, 4))
    p64 = p32.reshape(b, h8 // 8, 2, w8 // 8, 2, c).mean(axis=(2, 4))
    return {8: p8, 16: p16, 32: p32, 64: p64}


def _nearest_up(x_nhwc, factor):
    if factor == 1:
        return x_nhwc
    x = jnp.repeat(x_nhwc, factor, axis=1)
    return jnp.repeat(x, factor, axis=2)


# --------------------------------------------------------------------------
# DIFFEncoder forward
# --------------------------------------------------------------------------
def diff_encoder_forward(fused_params, img_nchw):
    b, c, h, w = img_nchw.shape
    h8, w8 = h // 8, w // 8

    # 1) surrogate diffusion_extractor pooling (3-channel maps only).
    pools = _hierarchical_pools(img_nchw)
    xs = [_nearest_up(pools[s], s // 8) for s in STRIDES]          # coarsest first
    x_all = jnp.concatenate(xs, axis=-1).reshape(b * h8 * w8, 3 * N_LEVELS)
    x_all = x_all.astype(jnp.bfloat16)

    # 2+3) fused extract-lift + StrideAggregationNetwork + Finecoder (Pallas).
    fine = fused_network_pallas(x_all, fused_params)               # (N8, 64) f32
    fine = fine.reshape(b, h8, w8, PROJECTION_DIM_X4)

    # transpose on the small pre-upsample tensor, then x2 nearest upsample.
    fine = jnp.transpose(fine, (0, 3, 1, 2))                        # NCHW @ stride 8
    fine = jnp.repeat(jnp.repeat(fine, 2, axis=2), 2, axis=3)       # stride 4
    return fine


# --------------------------------------------------------------------------
# Parameters: unfused (mirrors module structure) + host-side folding.
# --------------------------------------------------------------------------
def init_params(key):
    keys = jax.random.split(key, 40)
    ki = iter(range(40))
    params = {"extract": [], "agg": []}
    for cdim in FEATURE_DIMS:
        params["extract"].append({
            "w": (1.0 / jnp.sqrt(3.0)) *
                 jax.random.normal(keys[next(ki)], (3, cdim), jnp.float32),
            "b": 0.1 * jax.random.normal(keys[next(ki)], (cdim,), jnp.float32),
        })
    for level, cdim in enumerate(FEATURE_DIMS):
        params["agg"].append({
            "w1": (1.0 / jnp.sqrt(cdim)) *
                  jax.random.normal(keys[next(ki)], (cdim, AGG_HIDDEN), jnp.float32),
            "b1": 0.1 * jax.random.normal(keys[next(ki)], (AGG_HIDDEN,), jnp.float32),
            "w2": (1.0 / jnp.sqrt(AGG_HIDDEN)) *
                  jax.random.normal(keys[next(ki)], (AGG_HIDDEN, PROJECTION_DIM), jnp.float32),
            "b2": 0.1 * jax.random.normal(keys[next(ki)], (PROJECTION_DIM,), jnp.float32),
            "mix": jnp.float32(1.0 / (level + 1)),
        })
    params["fine"] = {
        "w1": (1.0 / jnp.sqrt(4.0 * PROJECTION_DIM)) *
              jax.random.normal(keys[next(ki)], (4 * PROJECTION_DIM, PROJECTION_DIM_X4), jnp.float32),
        "b1": 0.1 * jax.random.normal(keys[next(ki)], (PROJECTION_DIM_X4,), jnp.float32),
        "w2": (1.0 / jnp.sqrt(float(PROJECTION_DIM_X4))) *
              jax.random.normal(keys[next(ki)], (PROJECTION_DIM_X4, PROJECTION_DIM_X4), jnp.float32),
        "b2": 0.1 * jax.random.normal(keys[next(ki)], (PROJECTION_DIM_X4,), jnp.float32),
    }
    return params


def prepare_fused_params(params):
    """Fold channel-lift + mix into block-diagonal weights (exact algebra)."""
    cin = 3 * N_LEVELS
    hid = AGG_HIDDEN * N_LEVELS
    pjd = PROJECTION_DIM * N_LEVELS
    w1bd = jnp.zeros((cin, hid), jnp.float32)
    b1cat = jnp.zeros((hid,), jnp.float32)
    w2bd = jnp.zeros((hid, pjd), jnp.float32)
    b2cat = jnp.zeros((pjd,), jnp.float32)
    for lvl in range(N_LEVELS):
        ext, agg = params["extract"][lvl], params["agg"][lvl]
        w1_eff = ext["w"] @ agg["w1"]                       # (3, AGG_HIDDEN)
        b1_eff = ext["b"] @ agg["w1"] + agg["b1"]           # (AGG_HIDDEN,)
        w2_eff = agg["w2"] * agg["mix"]                     # mix folded
        b2_eff = agg["b2"] * agg["mix"]
        w1bd = w1bd.at[3 * lvl:3 * (lvl + 1),
                       AGG_HIDDEN * lvl:AGG_HIDDEN * (lvl + 1)].set(w1_eff)
        b1cat = b1cat.at[AGG_HIDDEN * lvl:AGG_HIDDEN * (lvl + 1)].set(b1_eff)
        w2bd = w2bd.at[AGG_HIDDEN * lvl:AGG_HIDDEN * (lvl + 1),
                       PROJECTION_DIM * lvl:PROJECTION_DIM * (lvl + 1)].set(w2_eff)
        b2cat = b2cat.at[PROJECTION_DIM * lvl:PROJECTION_DIM * (lvl + 1)].set(b2_eff)
    f = params["fine"]
    return {
        "w1": w1bd.astype(jnp.bfloat16), "b1": b1cat.reshape(1, -1),
        "w2": w2bd.astype(jnp.bfloat16), "b2": b2cat.reshape(1, -1),
        "wf1": f["w1"].astype(jnp.bfloat16), "bf1": f["b1"].reshape(1, -1),
        "wf2": f["w2"].astype(jnp.bfloat16), "bf2": f["b2"].reshape(1, -1),
    }


# --------------------------------------------------------------------------
# Pure-JAX f32 reference of the same surrogate (unfused path) for validation.
# --------------------------------------------------------------------------
def reference_forward(params, img_nchw):
    b, c, h, w = img_nchw.shape
    pools = _hierarchical_pools(img_nchw)
    ups = []
    for s, ext, agg in zip(STRIDES, params["extract"], params["agg"]):
        p = pools[s]                                          # (b, hs, ws, 3)
        f = p @ ext["w"] + ext["b"]                           # channel lift
        hdn = jnp.maximum(f @ agg["w1"] + agg["b1"], 0.0)
        prj = (hdn @ agg["w2"] + agg["b2"]) * agg["mix"]
        ups.append(_nearest_up(prj, s // 8))
    cat = jnp.concatenate(ups, axis=-1)                       # (b, h8, w8, 128)
    fw = params["fine"]
    hf = jnp.maximum(cat @ fw["w1"] + fw["b1"], 0.0)
    y = jnp.maximum(hf @ fw["w2"] + fw["b2"], 0.0)
    y = jnp.transpose(y, (0, 3, 1, 2))
    y = jnp.repeat(jnp.repeat(y, 2, axis=2), 2, axis=3)
    return y


if __name__ == "__main__":
    key = jax.random.PRNGKey(0)
    pkey, xkey = jax.random.split(key)
    params = init_params(pkey)
    fused_params = prepare_fused_params(params)

    # Small shape consistent with the forward (H, W divisible by 64);
    # N8 = 2*32*32 = 2048 rows -> 4 grid steps of 512 rows.
    B, H, W = 2, 256, 256
    img = jax.random.normal(xkey, (B, 3, H, W), jnp.float32)     # NCHW like PyTorch

    fwd = jax.jit(diff_encoder_forward)
    out = jax.block_until_ready(fwd(fused_params, img))

    assert out.shape == (B, PROJECTION_DIM_X4, H // 4, W // 4), out.shape
    assert bool(jnp.all(jnp.isfinite(out)))

    ref = jax.block_until_ready(jax.jit(reference_forward)(params, img))
    rel_err = float(jnp.max(jnp.abs(out - ref)) / (jnp.max(jnp.abs(ref)) + 1e-8))
    assert rel_err < 5e-2, rel_err

    print("KERNEL_OK")
</pallas_src>

<mosaic_0001>
module attributes {stable_mosaic.version = 11 : i64} {
  func.func @_fused_forward_kernel(%arg0: i32, %arg1: memref<512x12xbf16, #tpu.memory_space<vmem>>, %arg2: memref<12x256xbf16, #tpu.memory_space<vmem>>, %arg3: memref<1x256xf32, #tpu.memory_space<vmem>>, %arg4: memref<256x128xbf16, #tpu.memory_space<vmem>>, %arg5: memref<1x128xf32, #tpu.memory_space<vmem>>, %arg6: memref<128x64xbf16, #tpu.memory_space<vmem>>, %arg7: memref<1x64xf32, #tpu.memory_space<vmem>>, %arg8: memref<64x64xbf16, #tpu.memory_space<vmem>>, %arg9: memref<1x64xf32, #tpu.memory_space<vmem>>, %arg10: memref<512x64xf32, #tpu.memory_space<vmem>>) attributes {dimension_semantics = [#tpu.dimension_semantics<parallel>], iteration_bounds = array<i64: 4>, scalar_prefetch = 0 : i64, scratch_operands = 0 : i64, tpu.core_type = #tpu.core_type<tc>, window_params = [{transform_indices = @transform_0, window_bounds = array<i64: 512, 12>}, {pipeline_mode = #tpu.pipeline_mode<synchronous>, transform_indices = @transform_1, window_bounds = array<i64: 12, 256>}, {pipeline_mode = #tpu.pipeline_mode<synchronous>, transform_indices = @transform_2, window_bounds = array<i64: 1, 256>}, {pipeline_mode = #tpu.pipeline_mode<synchronous>, transform_indices = @transform_3, window_bounds = array<i64: 256, 128>}, {pipeline_mode = #tpu.pipeline_mode<synchronous>, transform_indices = @transform_4, window_bounds = array<i64: 1, 128>}, {pipeline_mode = #tpu.pipeline_mode<synchronous>, transform_indices = @transform_5, window_bounds = array<i64: 128, 64>}, {pipeline_mode = #tpu.pipeline_mode<synchronous>, transform_indices = @transform_6, window_bounds = array<i64: 1, 64>}, {pipeline_mode = #tpu.pipeline_mode<synchronous>, transform_indices = @transform_7, window_bounds = array<i64: 64, 64>}, {pipeline_mode = #tpu.pipeline_mode<synchronous>, transform_indices = @transform_8, window_bounds = array<i64: 1, 64>}, {transform_indices = @transform_9, window_bounds = array<i64: 512, 64>}]} {
    %c0 = arith.constant 0 : index
    %c0_0 = arith.constant 0 : index
    %0 = vector.load %arg1[%c0, %c0_0] : memref<512x12xbf16, #tpu.memory_space<vmem>>, vector<512x12xbf16>
    %c0_1 = arith.constant 0 : index
    %c0_2 = arith.constant 0 : index
    %1 = vector.load %arg2[%c0_1, %c0_2] : memref<12x256xbf16, #tpu.memory_space<vmem>>, vector<12x256xbf16>
    %cst = arith.constant dense<0.000000e+00> : vector<512x256xf32>
    %2 = tpu.matmul %0, %1, %cst {dimension_numbers = #tpu.dot_dimension_numbers<[1], [0], [0], [1], [0, 0, 1, 1], [], []>} : vector<512x12xbf16>, vector<12x256xbf16>, vector<512x256xf32> -> vector<512x256xf32>
    %c0_3 = arith.constant 0 : index
    %c0_4 = arith.constant 0 : index
    %3 = vector.load %arg3[%c0_3, %c0_4] : memref<1x256xf32, #tpu.memory_space<vmem>>, vector<1x256xf32>
    %4 = vector.broadcast %3 : vector<1x256xf32> to vector<512x256xf32>
    %5 = arith.addf %2, %4 : vector<512x256xf32>
    %cst_5 = arith.constant 0.000000e+00 : f32
    %6 = vector.broadcast %cst_5 : f32 to vector<512x256xf32>
    %7 = arith.maximumf %5, %6 : vector<512x256xf32>
    %8 = arith.truncf %7 : vector<512x256xf32> to vector<512x256xbf16>
    %c0_6 = arith.constant 0 : index
    %c0_7 = arith.constant 0 : index
    %9 = vector.load %arg4[%c0_6, %c0_7] : memref<256x128xbf16, #tpu.memory_space<vmem>>, vector<256x128xbf16>
    %cst_8 = arith.constant dense<0.000000e+00> : vector<512x128xf32>
    %10 = tpu.matmul %8, %9, %cst_8 {dimension_numbers = #tpu.dot_dimension_numbers<[1], [0], [0], [1], [0, 0, 1, 1], [], []>} : vector<512x256xbf16>, vector<256x128xbf16>, vector<512x128xf32> -> vector<512x128xf32>
    %c0_9 = arith.constant 0 : index
    %c0_10 = arith.constant 0 : index
    %11 = vector.load %arg5[%c0_9, %c0_10] : memref<1x128xf32, #tpu.memory_space<vmem>>, vector<1x128xf32>
    %12 = vector.broadcast %11 : vector<1x128xf32> to vector<512x128xf32>
    %13 = arith.addf %10, %12 : vector<512x128xf32>
    %14 = arith.truncf %13 : vector<512x128xf32> to vector<512x128xbf16>
    %c0_11 = arith.constant 0 : index
    %c0_12 = arith.constant 0 : index
    %15 = vector.load %arg6[%c0_11, %c0_12] : memref<128x64xbf16, #tpu.memory_space<vmem>>, vector<128x64xbf16>
    %cst_13 = arith.constant dense<0.000000e+00> : vector<512x64xf32>
    %16 = tpu.matmul %14, %15, %cst_13 {dimension_numbers = #tpu.dot_dimension_numbers<[1], [0], [0], [1], [0, 0, 1, 1], [], []>} : vector<512x128xbf16>, vector<128x64xbf16>, vector<512x64xf32> -> vector<512x64xf32>
    %c0_14 = arith.constant 0 : index
    %c0_15 = arith.constant 0 : index
    %17 = vector.load %arg7[%c0_14, %c0_15] : memref<1x64xf32, #tpu.memory_space<vmem>>, vector<1x64xf32>
    %18 = vector.broadcast %17 : vector<1x64xf32> to vector<512x64xf32>
    %19 = arith.addf %16, %18 : vector<512x64xf32>
    %cst_16 = arith.constant 0.000000e+00 : f32
    %20 = vector.broadcast %cst_16 : f32 to vector<512x64xf32>
    %21 = arith.maximumf %19, %20 : vector<512x64xf32>
    %22 = arith.truncf %21 : vector<512x64xf32> to vector<512x64xbf16>
    %c0_17 = arith.constant 0 : index
    %c0_18 = arith.constant 0 : index
    %23 = vector.load %arg8[%c0_17, %c0_18] : memref<64x64xbf16, #tpu.memory_space<vmem>>, vector<64x64xbf16>
    %cst_19 = arith.constant dense<0.000000e+00> : vector<512x64xf32>
    %24 = tpu.matmul %22, %23, %cst_19 {dimension_numbers = #tpu.dot_dimension_numbers<[1], [0], [0], [1], [0, 0, 1, 1], [], []>} : vector<512x64xbf16>, vector<64x64xbf16>, vector<512x64xf32> -> vector<512x64xf32>
    %c0_20 = arith.constant 0 : index
    %c0_21 = arith.constant 0 : index
    %25 = vector.load %arg9[%c0_20, %c0_21] : memref<1x64xf32, #tpu.memory_space<vmem>>, vector<1x64xf32>
    %26 = vector.broadcast %25 : vector<1x64xf32> to vector<512x64xf32>
    %27 = arith.addf %24, %26 : vector<512x64xf32>
    %cst_22 = arith.constant 0.000000e+00 : f32
    %28 = vector.broadcast %cst_22 : f32 to vector<512x64xf32>
    %29 = arith.maximumf %27, %28 : vector<512x64xf32>
    %c0_23 = arith.constant 0 : index
    %c0_24 = arith.constant 0 : index
    %30 = vector.load %arg10[%c0_23, %c0_24] : memref<512x64xf32, #tpu.memory_space<vmem>>, vector<512x64xf32>
    tpu.vector_store %arg10[%c0_23, %c0_24], %29 {strides = array<i32>} : memref<512x64xf32, #tpu.memory_space<vmem>>, vector<512x64xf32>,
    return
  }
  func.func @transform_0(%arg0: i32) -> (i32, i32) {
    %c0_i32 = arith.constant 0 : i32
    %c0_i32_0 = arith.constant 0 : i32
    return %arg0, %c0_i32 : i32, i32
  }
  func.func @transform_1(%arg0: i32) -> (i32, i32) {
    %c0_i32 = arith.constant 0 : i32
    %c0_i32_0 = arith.constant 0 : i32
    %c0_i32_1 = arith.constant 0 : i32
    return %c0_i32, %c0_i32_0 : i32, i32
  }
  func.func @transform_2(%arg0: i32) -> (i32, i32) {
    %c0_i32 = arith.constant 0 : i32
    %c0_i32_0 = arith.constant 0 : i32
    %c0_i32_1 = arith.constant 0 : i32
    return %c0_i32, %c0_i32_0 : i32, i32
  }
  func.func @transform_3(%arg0: i32) -> (i32, i32) {
    %c0_i32 = arith.constant 0 : i32
    %c0_i32_0 = arith.constant 0 : i32
    %c0_i32_1 = arith.constant 0 : i32
    return %c0_i32, %c0_i32_0 : i32, i32
  }
  func.func @transform_4(%arg0: i32) -> (i32, i32) {
    %c0_i32 = arith.constant 0 : i32
    %c0_i32_0 = arith.constant 0 : i32
    %c0_i32_1 = arith.constant 0 : i32
    return %c0_i32, %c0_i32_0 : i32, i32
  }
  func.func @transform_5(%arg0: i32) -> (i32, i32) {
    %c0_i32 = arith.constant 0 : i32
    %c0_i32_0 = arith.constant 0 : i32
    %c0_i32_1 = arith.constant 0 : i32
    return %c0_i32, %c0_i32_0 : i32, i32
  }
  func.func @transform_6(%arg0: i32) -> (i32, i32) {
    %c0_i32 = arith.constant 0 : i32
    %c0_i32_0 = arith.constant 0 : i32
    %c0_i32_1 = arith.constant 0 : i32
    return %c0_i32, %c0_i32_0 : i32, i32
  }
  func.func @transform_7(%arg0: i32) -> (i32, i32) {
    %c0_i32 = arith.constant 0 : i32
    %c0_i32_0 = arith.constant 0 : i32
    %c0_i32_1 = arith.constant 0 : i32
    return %c0_i32, %c0_i32_0 : i32, i32
  }
  func.func @transform_8(%arg0: i32) -> (i32, i32) {
    %c0_i32 = arith.constant 0 : i32
    %c0_i32_0 = arith.constant 0 : i32
    %c0_i32_1 = arith.constant 0 : i32
    return %c0_i32, %c0_i32_0 : i32, i32
  }
  func.func @transform_9(%arg0: i32) -> (i32, i32) {
    %c0_i32 = arith.constant 0 : i32
    %c0_i32_0 = arith.constant 0 : i32
    return %arg0, %c0_i32 : i32, i32
  }
}

</mosaic_0001>

<bundles_post_ra>
// kernel: diff_encoder_forward.1
= control target key start
LH: loop header
LB: loop body
LE: loop exit
PB: predicated region body
PF: predicated region fallthrough
CT: control target
= control target key end

     0   :  { %s3261_s30 = smov 0   ;;  %s3990_s0 = inlined_call_operand.vmem [shape: bf16[2048,12], index: 0, kind: input, shape index: {}]   ;;  %s3991_s1 = inlined_call_operand.vmem [shape: bf16[12,256], index: 1, kind: input, shape index: {}]   ;;  %s3992_s2 = inlined_call_operand.vmem [shape: f32[1,256], index: 2, kind: input, shape index: {}]   ;;  %s3993_s3 = inlined_call_operand.vmem [shape: bf16[256,128], index: 3, kind: input, shape index: {}]   ;;  %s3994_s4 = inlined_call_operand.vmem [shape: f32[1,128], index: 4, kind: input, shape index: {}]   ;;  %s3995_s5 = inlined_call_operand.vmem [shape: bf16[128,64], index: 5, kind: input, shape index: {}]   ;;  %s3996_s6 = inlined_call_operand.vmem [shape: f32[1,64], index: 6, kind: input, shape index: {}]   ;;  %s3997_s7 = inlined_call_operand.vmem [shape: bf16[64,64], index: 7, kind: input, shape index: {}]   ;;  %s3998_s8 = inlined_call_operand.vmem [shape: f32[1,64], index: 8, kind: input, shape index: {}]   ;;  %s3999_s9 = inlined_call_operand.vmem [shape: f32[2048,64], index: 9, kind: output, shape index: {}]  }
   0x1 LB: > { %s2753_s10 = sadd.s32 4294967295, %s3208_s30   ;;  %p2757_p0 = scmp.ge.s32.totalorder %s3208_s30, 1  ;;  %s3208_s30 = sphi %s3261_s30, %s19_s30  }
   0x2   : > { %p288_p1 = scmp.lt.s32.totalorder %s3208_s30, 5 }
   0x4   : > { %p289_p2 = pnand %p2757_p0, %p288_p1 }
   0x5   : > { %v3139_v0 = vld [vmem:[%s3991_s1 + $0x4] ss:$8 sps:$4 sm:$0x3f] (!%p289_p2)   ;;  %vm680_vm0 = vcmask (!%p289_p2), 1045504   ;;  %s2758_s15 = sshll.u32 (!%p289_p2), %s2753_s10, 6  ;;  %v3210_v2 = vmov (!%p289_p2), 0   ;;  %v405_v47 = vlaneseq (!%p289_p2) }
   0x6   : > { %292 = sbr.rel (%p289_p2) target bundleno = 1147 (0x47b), region = 56  ;;  %v3141_v1 = vld [vmem:[%s3991_s1] ss:$8 sps:$4 sm:$0x3f] (!%p289_p2)   ;;  %2796 = vmatprep.subr.msk.bf16.mxu0 (!%p289_p2), %vm680_vm0, %v3139_v0  ;;  %719 = vmatprep.mubr.bf16.mxu0 (!%p289_p2), %v3210_v2  ;;  %p325_p3 = scmp.lt.s32.totalorder (!%p289_p2), %s2758_s15, 255  ;;  %vm583_vm1 = vcmask (!%p289_p2), 97280  }
   0x7   : > { %v682_v3 = vsel (!%p289_p2), %vm680_vm0, %v3141_v1, 0  ;;  %1367 = vmatprep.subr.bf16.mxu1 (!%p289_p2), %v3210_v2  ;;  %v3162_v8 = vld [vmem:[%s3993_s3] sm:$0xff] (!%p289_p2)   ;;  %v3164_v10 = vld [vmem:[%s3993_s3 + $0x8] sm:$0xff] (!%p289_p2)   ;;  %v3165_v11 = vld [vmem:[%s3993_s3 + $0x10] sm:$0xff] (!%p289_p2)   ;;  %v406_v48 = vshrl.u32 (!%p289_p2), %v405_v47, 7  ;;  %vm2183_vm2 = vcmask (!%p289_p2), 523264  }
   0x8   : > { %688 = vmatpush1.bf16.msra.mxu0 (!%p289_p2), %v682_v3  ;;  %1368 = vmatpush1.bf16.msra.mxu1 (!%p289_p2), %v3162_v8  ;;  %v3167_v13 = vld [vmem:[%s3993_s3 + $0x18] sm:$0xff] (!%p289_p2)   ;;  %v3168_v14 = vld [vmem:[%s3993_s3 + $0x20] sm:$0xff] (!%p289_p2)   ;;  %v3170_v16 = vld [vmem:[%s3993_s3 + $0x28] sm:$0xff] (!%p289_p2)  }
   0x9   : > { %1369 = vmatprep.subr.bf16.mxu1 (!%p289_p2), %v3210_v2  ;;  %v3171_v17 = vld [vmem:[%s3993_s3 + $0x30] sm:$0xff] (!%p289_p2)   ;;  %v3173_v19 = vld [vmem:[%s3993_s3 + $0x38] sm:$0xff] (!%p289_p2)   ;;  %v3174_v20 = vld [vmem:[%s3993_s3 + $0x40] sm:$0xff] (!%p289_p2)   ;;  %v407_v50 = vsub.s32 (!%p289_p2), 0, %v406_v48  ;;  %v411_v52 = vsub.s32 (!%p289_p2), 1, %v406_v48 }
   0xa   : > { %v3176_v22 = vld [vmem:[%s3993_s3 + $0x48] sm:$0xff] (!%p289_p2)   ;;  %v3177_v23 = vld [vmem:[%s3993_s3 + $0x50] sm:$0xff] (!%p289_p2)   ;;  %v3179_v25 = vld [vmem:[%s3993_s3 + $0x58] sm:$0xff] (!%p289_p2)  }
   0xb   : > { %v3180_v26 = vld [vmem:[%s3993_s3 + $0x60] sm:$0xff] (!%p289_p2)   ;;  %v3182_v28 = vld [vmem:[%s3993_s3 + $0x68] sm:$0xff] (!%p289_p2)   ;;  %v3183_v30 = vld [vmem:[%s3993_s3 + $0x70] sm:$0xff] (!%p289_p2)  }
   0xc   : > { %1370 = vmatpush1.bf16.msra.mxu1 (!%p289_p2), %v3164_v10  ;;  %v3185_v31 = vld [vmem:[%s3993_s3 + $0x78] sm:$0xff] (!%p289_p2)   ;;  %v3190_v44 = vld [vmem:[%s3995_s5] sm:$0xff] (!%p289_p2)   ;;  %v3191_v8 = vld [vmem:[%s3995_s5 + $0x8] sm:$0xff] (!%p289_p2)  }
   0xd   : > { %s4001_s15 = smov (!%p325_p3, %s2758_s15), 255  ;;  %1371 = vmatprep.subr.bf16.mxu1 %v3210_v2  ;;  %2970 = vmatprep.subr.bf16.mxu0 %v3190_v44  ;;  %v403_v51 = vld [vmem:[%s3992_s2] sm:$0x3] }
   0xe   : > { %s2759_s16 = sshll.u32 %s4001_s15, 2  ;;  %v3434_v53 = vrot.slane %v403_v51, %v407_v50  ;;  %v3436_v54 = vrot.slane %v403_v51, %v411_v52  ;;  %s2761_s28 = sshll.u32 %s4001_s15, 3 }
   0xf   : > { %s3283_s19 = scalar_lea.vmem %s3990_s0, %s2759_s16  ;;  %s3792_s11 = scalar_lea.vmem %s3999_s9, %s2761_s28 }
  0x10   : > { %v3142_v4 = vld [vmem:[%s3283_s19] sm:$0xff]   ;;  %v3143_v5 = vld [vmem:[%s3283_s19 + $0x8] sm:$0xff]   ;;  %v3144_v6 = vld [vmem:[%s3283_s19 + $0x10] sm:$0xff]   ;;  %1372 = vmatpush1.bf16.msra.mxu1 %v3165_v11 }
  0x11   : > { %2797 = vmatmul.mubr.msk.bf16.vlgmr.msra.gmra.mrb[0].mxu0 %vm583_vm1, %v3142_v4  ;;  %v3145_v7 = vld [vmem:[%s3283_s19 + $0x18] sm:$0xff]   ;;  %v3146_v9 = vld [vmem:[%s3283_s19 + $0x20] sm:$0xff]   ;;  %v3147_v12 = vld [vmem:[%s3283_s19 + $0x28] sm:$0xff]   ;;  %1373 = vmatprep.subr.bf16.mxu1 %v3210_v2 }
  0x12   : > { %729 = vmatprep.mubr.bf16.mxu0 %v3210_v2  ;;  %v3148_v15 = vld [vmem:[%s3283_s19 + $0x30] sm:$0xff]   ;;  %v3149_v18 = vld [vmem:[%s3283_s19 + $0x38] sm:$0xff]   ;;  %v3150_v21 = vld [vmem:[%s3283_s19 + $0x40] sm:$0xff]   ;;  %2971 = vmatpush3.bf16.msra.mxu0 %v3190_v44 }
  0x13   : > { %v3151_v24 = vld [vmem:[%s3283_s19 + $0x48] sm:$0xff]   ;;  %v3152_v27 = vld [vmem:[%s3283_s19 + $0x50] sm:$0xff]   ;;  %v3153_v29 = vld [vmem:[%s3283_s19 + $0x58] sm:$0xff]   ;;  %2972 = vmatprep.subr.bf16.mxu0 %v3191_v8 }
  0x14   : > { %1374 = vmatpush1.bf16.msra.mxu1 %v3167_v13  ;;  %v3154_v32 = vld [vmem:[%s3283_s19 + $0x60] sm:$0xff]   ;;  %v3155_v33 = vld [vmem:[%s3283_s19 + $0x68] sm:$0xff]   ;;  %v3156_v34 = vld [vmem:[%s3283_s19 + $0x70] sm:$0xff]  }
  0x15   : > { %1375 = vmatprep.subr.bf16.mxu1 %v3210_v2  ;;  %v3157_v35 = vld [vmem:[%s3283_s19 + $0x78] sm:$0xff]   ;;  %v3158_v36 = vld [vmem:[%s3283_s19 + $0x80] sm:$0xff]   ;;  %v3159_v37 = vld [vmem:[%s3283_s19 + $0x88] sm:$0xff]  }
  0x16   : > { %v3160_v38 = vld [vmem:[%s3283_s19 + $0x90] sm:$0xff]   ;;  %v3161_v39 = vld [vmem:[%s3283_s19 + $0x98] sm:$0xff]   ;;  %v3163_v40 = vld [vmem:[%s3283_s19 + $0xa0] sm:$0xff]   ;;  %2973 = vmatpush3.bf16.msra.mxu0 %v3191_v8 }
  0x17   : > { %v3166_v41 = vld [vmem:[%s3283_s19 + $0xa8] sm:$0xff]   ;;  %v3169_v42 = vld [vmem:[%s3283_s19 + $0xb0] sm:$0xff]   ;;  %v3172_v43 = vld [vmem:[%s3283_s19 + $0xb8] sm:$0xff]  }
  0x18   : > { %1376 = vmatpush1.bf16.msra.mxu1 %v3168_v14  ;;  %v3175_v45 = vld [vmem:[%s3283_s19 + $0xc0] sm:$0xff]   ;;  %v3178_v46 = vld [vmem:[%s3283_s19 + $0xc8] sm:$0xff]   ;;  %v3181_v49 = vld [vmem:[%s3283_s19 + $0xd0] sm:$0xff]  }
  0x19   : > { %2798 = vmatmul.mubr.msk.bf16.gmra.mrb[4].mxu0 %vm583_vm1, %v3143_v5  ;;  %1377 = vmatprep.subr.bf16.mxu1 %v3210_v2  ;;  %v3184_v58 = vld [vmem:[%s3283_s19 + $0xd8] sm:$0xff]   ;;  %v3186_v11 = vld [vmem:[%s3283_s19 + $0xe0] sm:$0xff]  }
  0x1a   : > { %739 = vmatprep.mubr.bf16.mxu0 %v3210_v2 }
  0x1c   : > { %1378 = vmatpush1.bf16.msra.mxu1 %v3170_v16 }
  0x1d   : > { %1379 = vmatprep.subr.bf16.mxu1 %v3210_v2 }
  0x20   : > { %1380 = vmatpush1.bf16.msra.mxu1 %v3171_v17 }
  0x21   : > { %2799 = vmatmul.mubr.msk.bf16.gmra.mrb[8].mxu0 %vm583_vm1, %v3144_v6  ;;  %1381 = vmatprep.subr.bf16.mxu1 %v3210_v2 }
  0x22   : > { %749 = vmatprep.mubr.bf16.mxu0 %v3210_v2 }
  0x24   : > { %1382 = vmatpush1.bf16.msra.mxu1 %v3173_v19 }
  0x25   : > { %1383 = vmatprep.subr.bf16.mxu1 %v3210_v2 }
  0x28   : > { %1384 = vmatpush1.bf16.msra.mxu1 %v3174_v20 }
  0x29   : > { %2800 = vmatmul.mubr.msk.bf16.gmra.mrb[12].mxu0 %vm583_vm1, %v3145_v7  ;;  %1385 = vmatprep.subr.bf16.mxu1 %v3210_v2 }
  0x2a   : > { %759 = vmatprep.mubr.bf16.mxu0 %v3210_v2 }
  0x2c   : > { %1386 = vmatpush1.bf16.msra.mxu1 %v3176_v22 }
  0x2d   : > { %1387 = vmatprep.subr.bf16.mxu1 %v3210_v2 }
  0x30   : > { %1388 = vmatpush1.bf16.msra.mxu1 %v3177_v23 }
  0x31   : > { %2801 = vmatmul.mubr.msk.bf16.gmra.mrb[16].mxu0 %vm583_vm1, %v3146_v9  ;;  %1389 = vmatprep.subr.bf16.mxu1 %v3210_v2 }
  0x32   : > { %769 = vmatprep.mubr.bf16.mxu0 %v3210_v2 }
  0x34   : > { %1390 = vmatpush1.bf16.msra.mxu1 %v3179_v25 }
  0x35   : > { %1391 = vmatprep.subr.bf16.mxu1 %v3210_v2 }
  0x38   : > { %1392 = vmatpush1.bf16.msra.mxu1 %v3180_v26  ;;  %v3187_v26 = vld [vmem:[%s3283_s19 + $0xe8] sm:$0xff]  }
  0x39   : > { %2802 = vmatmul.mubr.msk.bf16.gmra.mrb[20].mxu0 %vm583_vm1, %v3147_v12  ;;  %1393 = vmatprep.subr.bf16.mxu1 %v3210_v2 }
  0x3a   : > { %779 = vmatprep.mubr.bf16.mxu0 %v3210_v2 }
  0x3c   : > { %1394 = vmatpush1.bf16.msra.mxu1 %v3182_v28 }
  0x3d   : > { %1395 = vmatprep.subr.bf16.mxu1 %v3210_v2 }
  0x40   : > { %1396 = vmatpush1.bf16.msra.mxu1 %v3183_v30 }
  0x41   : > { %2803 = vmatmul.mubr.msk.bf16.gmra.mrb[24].mxu0 %vm583_vm1, %v3148_v15  ;;  %1397 = vmatprep.subr.bf16.mxu1 %v3210_v2 }
  0x42   : > { %789 = vmatprep.mubr.bf16.mxu0 %v3210_v2 }
  0x44   : > { %1398 = vmatpush1.bf16.msra.mxu1 %v3185_v31 }
  0x49   : > { %2804 = vmatmul.mubr.msk.bf16.gmra.mrb[28].mxu0 %vm583_vm1, %v3149_v18 }
  0x4a   : > { %799 = vmatprep.mubr.bf16.mxu0 %v3210_v2 }
  0x51   : > { %2805 = vmatmul.mubr.msk.bf16.gmra.mrb[32].mxu0 %vm583_vm1, %v3150_v21 }
  0x52   : > { %809 = vmatprep.mubr.bf16.mxu0 %v3210_v2 }
  0x59   : > { %2806 = vmatmul.mubr.msk.bf16.gmra.mrb[36].mxu0 %vm583_vm1, %v3151_v24 }
  0x5a   : > { %819 = vmatprep.mubr.bf16.mxu0 %v3210_v2 }
  0x61   : > { %2807 = vmatmul.mubr.msk.bf16.gmra.mrb[40].mxu0 %vm583_vm1, %v3152_v27 }
  0x62   : > { %829 = vmatprep.mubr.bf16.mxu0 %v3210_v2 }
  0x69   : > { %2808 = vmatmul.mubr.msk.bf16.gmra.mrb[44].mxu0 %vm583_vm1, %v3153_v29 }
  0x6a   : > { %839 = vmatprep.mubr.bf16.mxu0 %v3210_v2 }
  0x71   : > { %2809 = vmatmul.mubr.msk.bf16.gmra.mrb[48].mxu0 %vm583_vm1, %v3154_v32 }
  0x72   : > { %849 = vmatprep.mubr.bf16.mxu0 %v3210_v2 }
  0x79   : > { %2810 = vmatmul.mubr.msk.bf16.gmra.mrb[52].mxu0 %vm583_vm1, %v3155_v33 }
  0x7a   : > { %859 = vmatprep.mubr.bf16.mxu0 %v3210_v2 }
  0x81   : > { %2811 = vmatmul.mubr.msk.bf16.gmra.mrb[56].mxu0 %vm583_vm1, %v3156_v34 }
  0x82   : > { %869 = vmatprep.mubr.bf16.mxu0 %v3210_v2 }
  0x89   : > { %2812 = vmatmul.mubr.msk.bf16.gmra.mrb[60].mxu0 %vm583_vm1, %v3157_v35 }
  0x8a   : > { %879 = vmatprep.mubr.bf16.mxu0 %v3210_v2 }
  0x91   : > { %2813 = vmatmul.mubr.msk.bf16.gmra.mrb[64].mxu0 %vm583_vm1, %v3158_v36 }
  0x92   : > { %889 = vmatprep.mubr.bf16.mxu0 %v3210_v2 }
  0x99   : > { %2814 = vmatmul.mubr.msk.bf16.gmra.mrb[68].mxu0 %vm583_vm1, %v3159_v37 }
  0x9a   : > { %899 = vmatprep.mubr.bf16.mxu0 %v3210_v2 }
  0xa1   : > { %2815 = vmatmul.mubr.msk.bf16.gmra.mrb[72].mxu0 %vm583_vm1, %v3160_v38 }
  0xa2   : > { %909 = vmatprep.mubr.bf16.mxu0 %v3210_v2 }
  0xa9   : > { %2816 = vmatmul.mubr.msk.bf16.gmra.mrb[76].mxu0 %vm583_vm1, %v3161_v39 }
  0xaa   : > { %919 = vmatprep.mubr.bf16.mxu0 %v3210_v2 }
  0xb1   : > { %2817 = vmatmul.mubr.msk.bf16.gmra.mrb[80].mxu0 %vm583_vm1, %v3163_v40 }
  0xb2   : > { %929 = vmatprep.mubr.bf16.mxu0 %v3210_v2 }
  0xb9   : > { %2818 = vmatmul.mubr.msk.bf16.gmra.mrb[84].mxu0 %vm583_vm1, %v3166_v41  ;;  %v3188_v41 = vld [vmem:[%s3283_s19 + $0xf0] sm:$0xff]  }
  0xba   : > { %939 = vmatprep.mubr.bf16.mxu0 %v3210_v2 }
  0xc1   : > { %2819 = vmatmul.mubr.msk.bf16.gmra.mrb[88].mxu0 %vm583_vm1, %v3169_v42 }
  0xc2   : > { %949 = vmatprep.mubr.bf16.mxu0 %v3210_v2 }
  0xc9   : > { %2820 = vmatmul.mubr.msk.bf16.gmra.mrb[92].mxu0 %vm583_vm1, %v3172_v43 }
  0xca   : > { %959 = vmatprep.mubr.bf16.mxu0 %v3210_v2 }
  0xd1   : > { %2821 = vmatmul.mubr.msk.bf16.gmra.mrb[96].mxu0 %vm583_vm1, %v3175_v45 }
  0xd2   : > { %969 = vmatprep.mubr.bf16.mxu0 %v3210_v2 }
  0xd9   : > { %2822 = vmatmul.mubr.msk.bf16.gmra.mrb[100].mxu0 %vm583_vm1, %v3178_v46 }
  0xda   : > { %979 = vmatprep.mubr.bf16.mxu0 %v3210_v2 }
  0xe1   : > { %2823 = vmatmul.mubr.msk.bf16.gmra.mrb[104].mxu0 %vm583_vm1, %v3181_v49 }
  0xe2   : > { %989 = vmatprep.mubr.bf16.mxu0 %v3210_v2 }
  0xe4   : > { %v721_v55 = vpop.f32.mrb[0].mxu0 }
  0xe5   : > { %v722_v56 = vadd.f32 %v721_v55, %v3434_v53  ;;  %v723_v57 = vpop.f32.mrb[1].mxu0 }
  0xe6   : > { %v724_v59 = vadd.f32 %v723_v57, %v3436_v54  ;;  %v725_v60 = vpop.f32.mrb[2].mxu0 }
  0xe7   : > { %v726_v61 = vadd.f32 %v725_v60, %v3434_v53  ;;  %v727_v62 = vpop.f32.mrb[3].mxu0  ;;  %v1040_v0 = vmax.f32 %v722_v56, 0.0 }
  0xe8   : > { %v728_v63 = vadd.f32 %v727_v62, %v3436_v54  ;;  %v1041_v3 = vmax.f32 %v724_v59, 0.0 }
  0xe9   : > { %v1042_v1 = vmax.f32 %v726_v61, 0.0  ;;  %2824 = vmatmul.mubr.msk.bf16.gmra.mrb[108].mxu0 %vm583_vm1, %v3184_v58  ;;  %v3189_v58 = vld [vmem:[%s3283_s19 + $0xf8] sm:$0xff]  }
  0xea   : > { %v1043_v4 = vmax.f32 %v728_v63, 0.0  ;;  %999 = vmatprep.mubr.bf16.mxu0 %v3210_v2 }
  0xeb   : > { %v1168_v5 = vpack.c.bf16 %v1042_v1, %v1040_v0 }
  0xec   : > { %v731_v6 = vpop.f32.mrb[4].mxu0  ;;  %v1169_v7 = vpack.c.bf16 %v1043_v4, %v1041_v3 }
  0xed   : > { %v732_v9 = vadd.f32 %v731_v6, %v3434_v53  ;;  %v733_v10 = vpop.f32.mrb[5].mxu0 }
  0xee   : > { %v734_v12 = vadd.f32 %v733_v10, %v3436_v54  ;;  %v735_v13 = vpop.f32.mrb[6].mxu0  ;;  %1399 = vmatprep.mubr.bf16.mxu1 %v1169_v7  ;;  %v3192_v7 = vld [vmem:[%s3995_s5 + $0x10] sm:$0xff]  }
  0xef   : > { %v736_v14 = vadd.f32 %v735_v13, %v3434_v53  ;;  %v737_v15 = vpop.f32.mrb[7].mxu0  ;;  %1400 = vmatmul.mubr.bf16.vlgmr.msra.gmra.mrb[0].mxu1 %v1168_v5  ;;  %v1044_v17 = vmax.f32 %v732_v9, 0.0  ;;  %2974 = vmatprep.subr.bf16.mxu0 %v3192_v7 }
  0xf0   : > { %v738_v16 = vadd.f32 %v737_v15, %v3436_v54  ;;  %v1045_v19 = vmax.f32 %v734_v12, 0.0  ;;  %2975 = vmatpush3.bf16.msra.mxu0 %v3192_v7 }
  0xf1   : > { %v1046_v18 = vmax.f32 %v736_v14, 0.0  ;;  %2825 = vmatmul.mubr.msk.bf16.gmra.mrb[112].mxu0 %vm583_vm1, %v3186_v11 }
  0xf2   : > { %v1047_v20 = vmax.f32 %v738_v16, 0.0  ;;  %1009 = vmatprep.mubr.bf16.mxu0 %v3210_v2 }
  0xf3   : > { %v1170_v21 = vpack.c.bf16 %v1046_v18, %v1044_v17 }
  0xf4   : > { %v1171_v22 = vpack.c.bf16 %v1047_v20, %v1045_v19  ;;  %v741_v23 = vpop.f32.mrb[8].mxu0 }
  0xf5   : > { %v742_v24 = vadd.f32 %v741_v23, %v3434_v53  ;;  %v743_v25 = vpop.f32.mrb[9].mxu0 }
  0xf6   : > { %v744_v27 = vadd.f32 %v743_v25, %v3436_v54  ;;  %v745_v28 = vpop.f32.mrb[10].mxu0  ;;  %1407 = vmatprep.mubr.bf16.mxu1 %v1171_v22 }
  0xf7   : > { %v746_v29 = vadd.f32 %v745_v28, %v3434_v53  ;;  %v747_v30 = vpop.f32.mrb[11].mxu0  ;;  %1408 = vmatmul.mubr.bf16.gmra.mrb[4].mxu1 %v1170_v21  ;;  %v1048_v32 = vmax.f32 %v742_v24, 0.0 }
  0xf8   : > { %v748_v31 = vadd.f32 %v747_v30, %v3436_v54  ;;  %v1049_v34 = vmax.f32 %v744_v27, 0.0 }
  0xf9   : > { %v1050_v33 = vmax.f32 %v746_v29, 0.0  ;;  %2826 = vmatmul.mubr.msk.bf16.gmra.mrb[116].mxu0 %vm583_vm1, %v3187_v26 }
  0xfa   : > { %v1051_v35 = vmax.f32 %v748_v31, 0.0  ;;  %1019 = vmatprep.mubr.bf16.mxu0 %v3210_v2 }
  0xfb   : > { %v1172_v36 = vpack.c.bf16 %v1050_v33, %v1048_v32 }
  0xfc   : > { %v1173_v37 = vpack.c.bf16 %v1051_v35, %v1049_v34  ;;  %v751_v38 = vpop.f32.mrb[12].mxu0 }
  0xfd   : > { %v752_v39 = vadd.f32 %v751_v38, %v3434_v53  ;;  %v753_v40 = vpop.f32.mrb[13].mxu0 }
  0xfe   : > { %v754_v42 = vadd.f32 %v753_v40, %v3436_v54  ;;  %v755_v43 = vpop.f32.mrb[14].mxu0  ;;  %1415 = vmatprep.mubr.bf16.mxu1 %v1173_v37 }
  0xff   : > { %v756_v44 = vadd.f32 %v755_v43, %v3434_v53  ;;  %v757_v45 = vpop.f32.mrb[15].mxu0  ;;  %1416 = vmatmul.mubr.bf16.gmra.mrb[8].mxu1 %v1172_v36  ;;  %v1052_v47 = vmax.f32 %v752_v39, 0.0 }
 0x100   : > { %v758_v46 = vadd.f32 %v757_v45, %v3436_v54  ;;  %v1053_v49 = vmax.f32 %v754_v42, 0.0 }
 0x101   : > { %v1054_v48 = vmax.f32 %v756_v44, 0.0  ;;  %2827 = vmatmul.mubr.msk.bf16.gmra.mrb[120].mxu0 %vm583_vm1, %v3188_v41 }
 0x102   : > { %v1055_v50 = vmax.f32 %v758_v46, 0.0  ;;  %1029 = vmatprep.mubr.bf16.mxu0 %v3210_v2 }
 0x103   : > { %v1174_v51 = vpack.c.bf16 %v1054_v48, %v1052_v47 }
 0x104   : > { %v1175_v52 = vpack.c.bf16 %v1055_v50, %v1053_v49  ;;  %v761_v55 = vpop.f32.mrb[16].mxu0 }
 0x105   : > { %v762_v56 = vadd.f32 %v761_v55, %v3434_v53  ;;  %v763_v57 = vpop.f32.mrb[17].mxu0 }
 0x106   : > { %v764_v59 = vadd.f32 %v763_v57, %v3436_v54  ;;  %v765_v60 = vpop.f32.mrb[18].mxu0  ;;  %1423 = vmatprep.mubr.bf16.mxu1 %v1175_v52 }
 0x107   : > { %v766_v61 = vadd.f32 %v765_v60, %v3434_v53  ;;  %v767_v62 = vpop.f32.mrb[19].mxu0  ;;  %1424 = vmatmul.mubr.bf16.gmra.mrb[12].mxu1 %v1174_v51  ;;  %v1056_v0 = vmax.f32 %v762_v56, 0.0 }
 0x108   : > { %v768_v63 = vadd.f32 %v767_v62, %v3436_v54  ;;  %v1057_v2 = vmax.f32 %v764_v59, 0.0 }
 0x109   : > { %v1058_v1 = vmax.f32 %v766_v61, 0.0  ;;  %2828 = vmatmul.mubr.msk.bf16.gmra.mrb[124].mxu0 %vm583_vm1, %v3189_v58 }
 0x10a   : > { %v1059_v3 = vmax.f32 %v768_v63, 0.0 }
 0x10b   : > { %v1176_v4 = vpack.c.bf16 %v1058_v1, %v1056_v0 }
 0x10c   : > { %v1177_v5 = vpack.c.bf16 %v1059_v3, %v1057_v2  ;;  %v771_v6 = vpop.f32.mrb[20].mxu0  ;;  %v3193_v2 = vld [vmem:[%s3995_s5 + $0x18] sm:$0xff]  }
 0x10d   : > { %v772_v8 = vadd.f32 %v771_v6, %v3434_v53  ;;  %v773_v9 = vpop.f32.mrb[21].mxu0  ;;  %2976 = vmatprep.subr.bf16.mxu0 %v3193_v2 }
 0x10e   : > { %v774_v10 = vadd.f32 %v773_v9, %v3436_v54  ;;  %v775_v11 = vpop.f32.mrb[22].mxu0  ;;  %1431 = vmatprep.mubr.bf16.mxu1 %v1177_v5  ;;  %2977 = vmatpush3.bf16.msra.mxu0 %v3193_v2 }
 0x10f   : > { %v776_v12 = vadd.f32 %v775_v11, %v3434_v53  ;;  %v777_v13 = vpop.f32.mrb[23].mxu0  ;;  %1432 = vmatmul.mubr.bf16.gmra.mrb[16].mxu1 %v1176_v4  ;;  %v1060_v15 = vmax.f32 %v772_v8, 0.0 }
 0x110   : > { %v778_v14 = vadd.f32 %v777_v13, %v3436_v54  ;;  %v1061_v17 = vmax.f32 %v774_v10, 0.0 }
 0x111   : > { %v1062_v16 = vmax.f32 %v776_v12, 0.0 }
 0x112   : > { %v1063_v18 = vmax.f32 %v778_v14, 0.0 }
 0x113   : > { %v1178_v19 = vpack.c.bf16 %v1062_v16, %v1060_v15 }
 0x114   : > { %v1179_v20 = vpack.c.bf16 %v1063_v18, %v1061_v17  ;;  %v781_v21 = vpop.f32.mrb[24].mxu0 }
 0x115   : > { %v782_v22 = vadd.f32 %v781_v21, %v3434_v53  ;;  %v783_v23 = vpop.f32.mrb[25].mxu0 }
 0x116   : > { %v784_v24 = vadd.f32 %v783_v23, %v3436_v54  ;;  %v785_v25 = vpop.f32.mrb[26].mxu0  ;;  %1439 = vmatprep.mubr.bf16.mxu1 %v1179_v20 }
 0x117   : > { %v786_v26 = vadd.f32 %v785_v25, %v3434_v53  ;;  %v787_v27 = vpop.f32.mrb[27].mxu0  ;;  %1440 = vmatmul.mubr.bf16.gmra.mrb[20].mxu1 %v1178_v19  ;;  %v1064_v29 = vmax.f32 %v782_v22, 0.0 }
 0x118   : > { %v788_v28 = vadd.f32 %v787_v27, %v3436_v54  ;;  %v1065_v31 = vmax.f32 %v784_v24, 0.0 }
 0x119   : > { %v1066_v30 = vmax.f32 %v786_v26, 0.0 }
 0x11a   : > { %v1067_v32 = vmax.f32 %v788_v28, 0.0 }
 0x11b   : > { %v1180_v33 = vpack.c.bf16 %v1066_v30, %v1064_v29 }
 0x11c   : > { %v1181_v34 = vpack.c.bf16 %v1067_v32, %v1065_v31  ;;  %v791_v35 = vpop.f32.mrb[28].mxu0 }
 0x11d   : > { %v792_v36 = vadd.f32 %v791_v35, %v3434_v53  ;;  %v793_v37 = vpop.f32.mrb[29].mxu0 }
 0x11e   : > { %v794_v38 = vadd.f32 %v793_v37, %v3436_v54  ;;  %v795_v39 = vpop.f32.mrb[30].mxu0  ;;  %1447 = vmatprep.mubr.bf16.mxu1 %v1181_v34  ;;  %v3194_v37 = vld [vmem:[%s3995_s5 + $0x20] sm:$0xff]  }
 0x11f   : > { %v796_v40 = vadd.f32 %v795_v39, %v3434_v53  ;;  %v797_v41 = vpop.f32.mrb[31].mxu0  ;;  %1448 = vmatmul.mubr.bf16.gmra.mrb[24].mxu1 %v1180_v33  ;;  %v1068_v43 = vmax.f32 %v792_v36, 0.0  ;;  %2978 = vmatprep.subr.bf16.mxu0 %v3194_v37 }
 0x120   : > { %v798_v42 = vadd.f32 %v797_v41, %v3436_v54  ;;  %v1069_v45 = vmax.f32 %v794_v38, 0.0  ;;  %2979 = vmatpush3.bf16.msra.mxu0 %v3194_v37 }
 0x121   : > { %v1070_v44 = vmax.f32 %v796_v40, 0.0 }
 0x122   : > { %v1071_v46 = vmax.f32 %v798_v42, 0.0 }
 0x123   : > { %v1182_v47 = vpack.c.bf16 %v1070_v44, %v1068_v43  ;;  %v3195_v44 = vld [vmem:[%s3995_s5 + $0x28] sm:$0xff]  }
 0x124   : > { %v1183_v48 = vpack.c.bf16 %v1071_v46, %v1069_v45  ;;  %v801_v49 = vpop.f32.mrb[32].mxu0  ;;  %2980 = vmatprep.subr.bf16.mxu0 %v3195_v44 }
 0x125   : > { %v802_v50 = vadd.f32 %v801_v49, %v3434_v53  ;;  %v803_v51 = vpop.f32.mrb[33].mxu0  ;;  %2981 = vmatpush3.bf16.msra.mxu0 %v3195_v44 }
 0x126   : > { %v804_v52 = vadd.f32 %v803_v51, %v3436_v54  ;;  %v805_v55 = vpop.f32.mrb[34].mxu0  ;;  %1455 = vmatprep.mubr.bf16.mxu1 %v1183_v48 }
 0x127   : > { %v806_v56 = vadd.f32 %v805_v55, %v3434_v53  ;;  %v807_v57 = vpop.f32.mrb[35].mxu0  ;;  %1456 = vmatmul.mubr.bf16.gmra.mrb[28].mxu1 %v1182_v47  ;;  %v1072_v59 = vmax.f32 %v802_v50, 0.0  ;;  %v3196_v55 = vld [vmem:[%s3995_s5 + $0x30] sm:$0xff]  }
 0x128   : > { %v808_v58 = vadd.f32 %v807_v57, %v3436_v54  ;;  %v1073_v61 = vmax.f32 %v804_v52, 0.0  ;;  %2982 = vmatprep.subr.bf16.mxu0 %v3196_v55 }
 0x129   : > { %v1074_v60 = vmax.f32 %v806_v56, 0.0  ;;  %2983 = vmatpush3.bf16.msra.mxu0 %v3196_v55 }
 0x12a   : > { %v1075_v62 = vmax.f32 %v808_v58, 0.0 }
 0x12b   : > { %v1184_v63 = vpack.c.bf16 %v1074_v60, %v1072_v59 }
 0x12c   : > { %v1185_v0 = vpack.c.bf16 %v1075_v62, %v1073_v61  ;;  %v811_v1 = vpop.f32.mrb[36].mxu0  ;;  %v3197_v62 = vld [vmem:[%s3995_s5 + $0x38] sm:$0xff]  }
 0x12d   : > { %v812_v3 = vadd.f32 %v811_v1, %v3434_v53  ;;  %v813_v4 = vpop.f32.mrb[37].mxu0  ;;  %2984 = vmatprep.subr.bf16.mxu0 %v3197_v62 }
 0x12e   : > { %v814_v5 = vadd.f32 %v813_v4, %v3436_v54  ;;  %v815_v6 = vpop.f32.mrb[38].mxu0  ;;  %1463 = vmatprep.mubr.bf16.mxu1 %v1185_v0  ;;  %2985 = vmatpush3.bf16.msra.mxu0 %v3197_v62 }
 0x12f   : > { %v816_v7 = vadd.f32 %v815_v6, %v3434_v53  ;;  %v817_v8 = vpop.f32.mrb[39].mxu0  ;;  %1464 = vmatmul.mubr.bf16.gmra.mrb[32].mxu1 %v1184_v63  ;;  %v1076_v10 = vmax.f32 %v812_v3, 0.0 }
 0x130   : > { %v818_v9 = vadd.f32 %v817_v8, %v3436_v54  ;;  %v1077_v12 = vmax.f32 %v814_v5, 0.0 }
 0x131   : > { %v1078_v11 = vmax.f32 %v816_v7, 0.0 }
 0x132   : > { %v1079_v13 = vmax.f32 %v818_v9, 0.0 }
 0x133   : > { %v1186_v14 = vpack.c.bf16 %v1078_v11, %v1076_v10 }
 0x134   : > { %v1187_v15 = vpack.c.bf16 %v1079_v13, %v1077_v12  ;;  %v821_v16 = vpop.f32.mrb[40].mxu0 }
 0x135   : > { %v822_v17 = vadd.f32 %v821_v16, %v3434_v53  ;;  %v823_v18 = vpop.f32.mrb[41].mxu0 }
 0x136   : > { %v824_v19 = vadd.f32 %v823_v18, %v3436_v54  ;;  %v825_v20 = vpop.f32.mrb[42].mxu0  ;;  %1471 = vmatprep.mubr.bf16.mxu1 %v1187_v15 }
 0x137   : > { %v826_v21 = vadd.f32 %v825_v20, %v3434_v53  ;;  %v827_v22 = vpop.f32.mrb[43].mxu0  ;;  %1472 = vmatmul.mubr.bf16.gmra.mrb[36].mxu1 %v1186_v14  ;;  %v1080_v24 = vmax.f32 %v822_v17, 0.0 }
 0x138   : > { %v828_v23 = vadd.f32 %v827_v22, %v3436_v54  ;;  %v1081_v26 = vmax.f32 %v824_v19, 0.0 }
 0x139   : > { %v1082_v25 = vmax.f32 %v826_v21, 0.0 }
 0x13a   : > { %v1083_v27 = vmax.f32 %v828_v23, 0.0 }
 0x13b   : > { %v1188_v28 = vpack.c.bf16 %v1082_v25, %v1080_v24 }
 0x13c   : > { %v1189_v29 = vpack.c.bf16 %v1083_v27, %v1081_v26  ;;  %v831_v30 = vpop.f32.mrb[44].mxu0 }
 0x13d   : > { %v832_v31 = vadd.f32 %v831_v30, %v3434_v53  ;;  %v833_v32 = vpop.f32.mrb[45].mxu0 }
 0x13e   : > { %v834_v33 = vadd.f32 %v833_v32, %v3436_v54  ;;  %v835_v34 = vpop.f32.mrb[46].mxu0  ;;  %1479 = vmatprep.mubr.bf16.mxu1 %v1189_v29 }
 0x13f   : > { %v836_v35 = vadd.f32 %v835_v34, %v3434_v53  ;;  %v837_v36 = vpop.f32.mrb[47].mxu0  ;;  %1480 = vmatmul.mubr.bf16.gmra.mrb[40].mxu1 %v1188_v28  ;;  %v1084_v39 = vmax.f32 %v832_v31, 0.0 }
 0x140   : > { %v838_v38 = vadd.f32 %v837_v36, %v3436_v54  ;;  %v1085_v41 = vmax.f32 %v834_v33, 0.0 }
 0x141   : > { %v1086_v40 = vmax.f32 %v836_v35, 0.0 }
 0x142   : > { %v1087_v42 = vmax.f32 %v838_v38, 0.0 }
 0x143   : > { %v1190_v43 = vpack.c.bf16 %v1086_v40, %v1084_v39 }
 0x144   : > { %v1191_v45 = vpack.c.bf16 %v1087_v42, %v1085_v41  ;;  %v841_v46 = vpop.f32.mrb[48].mxu0 }
 0x145   : > { %v842_v47 = vadd.f32 %v841_v46, %v3434_v53  ;;  %v843_v48 = vpop.f32.mrb[49].mxu0 }
 0x146   : > { %v844_v49 = vadd.f32 %v843_v48, %v3436_v54  ;;  %v845_v50 = vpop.f32.mrb[50].mxu0  ;;  %1487 = vmatprep.mubr.bf16.mxu1 %v1191_v45 }
 0x147   : > { %v846_v51 = vadd.f32 %v845_v50, %v3434_v53  ;;  %v847_v52 = vpop.f32.mrb[51].mxu0  ;;  %1488 = vmatmul.mubr.bf16.gmra.mrb[44].mxu1 %v1190_v43  ;;  %v1088_v57 = vmax.f32 %v842_v47, 0.0 }
 0x148   : > { %v848_v56 = vadd.f32 %v847_v52, %v3436_v54  ;;  %v1089_v59 = vmax.f32 %v844_v49, 0.0 }
 0x149   : > { %v1090_v58 = vmax.f32 %v846_v51, 0.0 }
 0x14a   : > { %v1091_v60 = vmax.f32 %v848_v56, 0.0 }
 0x14b   : > { %v1192_v61 = vpack.c.bf16 %v1090_v58, %v1088_v57 }
 0x14c   : > { %v1193_v63 = vpack.c.bf16 %v1091_v60, %v1089_v59  ;;  %v851_v0 = vpop.f32.mrb[52].mxu0 }
 0x14d   : > { %v852_v1 = vadd.f32 %v851_v0, %v3434_v53  ;;  %v853_v2 = vpop.f32.mrb[53].mxu0 }
 0x14e   : > { %v854_v3 = vadd.f32 %v853_v2, %v3436_v54  ;;  %v855_v4 = vpop.f32.mrb[54].mxu0  ;;  %1495 = vmatprep.mubr.bf16.mxu1 %v1193_v63 }
 0x14f   : > { %v856_v5 = vadd.f32 %v855_v4, %v3434_v53  ;;  %v857_v6 = vpop.f32.mrb[55].mxu0  ;;  %1496 = vmatmul.mubr.bf16.gmra.mrb[48].mxu1 %v1192_v61  ;;  %v1092_v8 = vmax.f32 %v852_v1, 0.0 }
 0x150   : > { %v858_v7 = vadd.f32 %v857_v6, %v3436_v54  ;;  %v1093_v10 = vmax.f32 %v854_v3, 0.0 }
 0x151   : > { %v1094_v9 = vmax.f32 %v856_v5, 0.0 }
 0x152   : > { %v1095_v11 = vmax.f32 %v858_v7, 0.0 }
 0x153   : > { %v1194_v12 = vpack.c.bf16 %v1094_v9, %v1092_v8 }
 0x154   : > { %v1195_v13 = vpack.c.bf16 %v1095_v11, %v1093_v10  ;;  %v861_v14 = vpop.f32.mrb[56].mxu0 }
 0x155   : > { %v862_v15 = vadd.f32 %v861_v14, %v3434_v53  ;;  %v863_v16 = vpop.f32.mrb[57].mxu0 }
 0x156   : > { %v864_v17 = vadd.f32 %v863_v16, %v3436_v54  ;;  %v865_v18 = vpop.f32.mrb[58].mxu0  ;;  %1503 = vmatprep.mubr.bf16.mxu1 %v1195_v13 }
 0x157   : > { %v866_v19 = vadd.f32 %v865_v18, %v3434_v53  ;;  %v867_v20 = vpop.f32.mrb[59].mxu0  ;;  %1504 = vmatmul.mubr.bf16.gmra.mrb[52].mxu1 %v1194_v12  ;;  %v1096_v22 = vmax.f32 %v862_v15, 0.0 }
 0x158   : > { %v868_v21 = vadd.f32 %v867_v20, %v3436_v54  ;;  %v1097_v24 = vmax.f32 %v864_v17, 0.0 }
 0x159   : > { %v1098_v23 = vmax.f32 %v866_v19, 0.0 }
 0x15a   : > { %v1099_v25 = vmax.f32 %v868_v21, 0.0 }
 0x15b   : > { %v1196_v26 = vpack.c.bf16 %v1098_v23, %v1096_v22 }
 0x15c   : > { %v1197_v27 = vpack.c.bf16 %v1099_v25, %v1097_v24  ;;  %v871_v28 = vpop.f32.mrb[60].mxu0 }
 0x15d   : > { %v872_v29 = vadd.f32 %v871_v28, %v3434_v53  ;;  %v873_v30 = vpop.f32.mrb[61].mxu0 }
 0x15e   : > { %v874_v31 = vadd.f32 %v873_v30, %v3436_v54  ;;  %v875_v32 = vpop.f32.mrb[62].mxu0  ;;  %1511 = vmatprep.mubr.bf16.mxu1 %v1197_v27 }
 0x15f   : > { %v876_v33 = vadd.f32 %v875_v32, %v3434_v53  ;;  %v877_v34 = vpop.f32.mrb[63].mxu0  ;;  %1512 = vmatmul.mubr.bf16.gmra.mrb[56].mxu1 %v1196_v26  ;;  %v1100_v36 = vmax.f32 %v872_v29, 0.0 }
 0x160   : > { %v878_v35 = vadd.f32 %v877_v34, %v3436_v54  ;;  %v1101_v38 = vmax.f32 %v874_v31, 0.0 }
 0x161   : > { %v1102_v37 = vmax.f32 %v876_v33, 0.0 }
 0x162   : > { %v1103_v39 = vmax.f32 %v878_v35, 0.0 }
 0x163   : > { %v1198_v40 = vpack.c.bf16 %v1102_v37, %v1100_v36 }
 0x164   : > { %v1199_v41 = vpack.c.bf16 %v1103_v39, %v1101_v38  ;;  %v881_v42 = vpop.f32.mrb[64].mxu0 }
 0x165   : > { %v882_v43 = vadd.f32 %v881_v42, %v3434_v53  ;;  %v883_v44 = vpop.f32.mrb[65].mxu0 }
 0x166   : > { %v884_v45 = vadd.f32 %v883_v44, %v3436_v54  ;;  %v885_v46 = vpop.f32.mrb[66].mxu0  ;;  %1519 = vmatprep.mubr.bf16.mxu1 %v1199_v41 }
 0x167   : > { %v886_v47 = vadd.f32 %v885_v46, %v3434_v53  ;;  %v887_v48 = vpop.f32.mrb[67].mxu0  ;;  %1520 = vmatmul.mubr.bf16.gmra.mrb[60].mxu1 %v1198_v40  ;;  %v1104_v50 = vmax.f32 %v882_v43, 0.0 }
 0x168   : > { %v888_v49 = vadd.f32 %v887_v48, %v3436_v54  ;;  %v1105_v52 = vmax.f32 %v884_v45, 0.0 }
 0x169   : > { %v1106_v51 = vmax.f32 %v886_v47, 0.0 }
 0x16a   : > { %v1107_v55 = vmax.f32 %v888_v49, 0.0 }
 0x16b   : > { %v1200_v56 = vpack.c.bf16 %v1106_v51, %v1104_v50 }
 0x16c   : > { %v1201_v57 = vpack.c.bf16 %v1107_v55, %v1105_v52  ;;  %v891_v58 = vpop.f32.mrb[68].mxu0 }
 0x16d   : > { %v892_v59 = vadd.f32 %v891_v58, %v3434_v53  ;;  %v893_v60 = vpop.f32.mrb[69].mxu0 }
 0x16e   : > { %v894_v61 = vadd.f32 %v893_v60, %v3436_v54  ;;  %v895_v62 = vpop.f32.mrb[70].mxu0  ;;  %1527 = vmatprep.mubr.bf16.mxu1 %v1201_v57 }
 0x16f   : > { %v896_v63 = vadd.f32 %v895_v62, %v3434_v53  ;;  %v897_v0 = vpop.f32.mrb[71].mxu0  ;;  %1528 = vmatmul.mubr.bf16.gmra.mrb[64].mxu1 %v1200_v56  ;;  %v1108_v2 = vmax.f32 %v892_v59, 0.0 }
 0x170   : > { %v898_v1 = vadd.f32 %v897_v0, %v3436_v54  ;;  %v1109_v4 = vmax.f32 %v894_v61, 0.0 }
 0x171   : > { %v1110_v3 = vmax.f32 %v896_v63, 0.0 }
 0x172   : > { %v1111_v5 = vmax.f32 %v898_v1, 0.0 }
 0x173   : > { %v1202_v6 = vpack.c.bf16 %v1110_v3, %v1108_v2 }
 0x174   : > { %v1203_v7 = vpack.c.bf16 %v1111_v5, %v1109_v4  ;;  %v901_v8 = vpop.f32.mrb[72].mxu0 }
 0x175   : > { %v902_v9 = vadd.f32 %v901_v8, %v3434_v53  ;;  %v903_v10 = vpop.f32.mrb[73].mxu0 }
 0x176   : > { %v904_v11 = vadd.f32 %v903_v10, %v3436_v54  ;;  %v905_v12 = vpop.f32.mrb[74].mxu0  ;;  %1535 = vmatprep.mubr.bf16.mxu1 %v1203_v7 }
 0x177   : > { %v906_v13 = vadd.f32 %v905_v12, %v3434_v53  ;;  %v907_v14 = vpop.f32.mrb[75].mxu0  ;;  %1536 = vmatmul.mubr.bf16.gmra.mrb[68].mxu1 %v1202_v6  ;;  %v1112_v16 = vmax.f32 %v902_v9, 0.0 }
 0x178   : > { %v908_v15 = vadd.f32 %v907_v14, %v3436_v54  ;;  %v1113_v18 = vmax.f32 %v904_v11, 0.0 }
 0x179   : > { %v1114_v17 = vmax.f32 %v906_v13, 0.0 }
 0x17a   : > { %v1115_v19 = vmax.f32 %v908_v15, 0.0 }
 0x17b   : > { %v1204_v20 = vpack.c.bf16 %v1114_v17, %v1112_v16 }
 0x17c   : > { %v1205_v21 = vpack.c.bf16 %v1115_v19, %v1113_v18  ;;  %v911_v22 = vpop.f32.mrb[76].mxu0 }
 0x17d   : > { %v912_v23 = vadd.f32 %v911_v22, %v3434_v53  ;;  %v913_v24 = vpop.f32.mrb[77].mxu0 }
 0x17e   : > { %v914_v25 = vadd.f32 %v913_v24, %v3436_v54  ;;  %v915_v26 = vpop.f32.mrb[78].mxu0  ;;  %1543 = vmatprep.mubr.bf16.mxu1 %v1205_v21 }
 0x17f   : > { %v916_v27 = vadd.f32 %v915_v26, %v3434_v53  ;;  %v917_v28 = vpop.f32.mrb[79].mxu0  ;;  %1544 = vmatmul.mubr.bf16.gmra.mrb[72].mxu1 %v1204_v20  ;;  %v1116_v30 = vmax.f32 %v912_v23, 0.0 }
 0x180   : > { %v918_v29 = vadd.f32 %v917_v28, %v3436_v54  ;;  %v1117_v32 = vmax.f32 %v914_v25, 0.0 }
 0x181   : > { %v1118_v31 = vmax.f32 %v916_v27, 0.0 }
 0x182   : > { %v1119_v33 = vmax.f32 %v918_v29, 0.0 }
 0x183   : > { %v1206_v34 = vpack.c.bf16 %v1118_v31, %v1116_v30 }
 0x184   : > { %v1207_v35 = vpack.c.bf16 %v1119_v33, %v1117_v32  ;;  %v921_v36 = vpop.f32.mrb[80].mxu0 }
 0x185   : > { %v922_v37 = vadd.f32 %v921_v36, %v3434_v53  ;;  %v923_v38 = vpop.f32.mrb[81].mxu0 }
 0x186   : > { %v924_v39 = vadd.f32 %v923_v38, %v3436_v54  ;;  %v925_v40 = vpop.f32.mrb[82].mxu0  ;;  %1551 = vmatprep.mubr.bf16.mxu1 %v1207_v35 }
 0x187   : > { %v926_v41 = vadd.f32 %v925_v40, %v3434_v53  ;;  %v927_v42 = vpop.f32.mrb[83].mxu0  ;;  %1552 = vmatmul.mubr.bf16.gmra.mrb[76].mxu1 %v1206_v34  ;;  %v1120_v44 = vmax.f32 %v922_v37, 0.0 }
 0x188   : > { %v928_v43 = vadd.f32 %v927_v42, %v3436_v54  ;;  %v1121_v46 = vmax.f32 %v924_v39, 0.0 }
 0x189   : > { %v1122_v45 = vmax.f32 %v926_v41, 0.0 }
 0x18a   : > { %v1123_v47 = vmax.f32 %v928_v43, 0.0 }
 0x18b   : > { %v1208_v48 = vpack.c.bf16 %v1122_v45, %v1120_v44 }
 0x18c   : > { %v1209_v49 = vpack.c.bf16 %v1123_v47, %v1121_v46  ;;  %v931_v50 = vpop.f32.mrb[84].mxu0 }
 0x18d   : > { %v932_v51 = vadd.f32 %v931_v50, %v3434_v53  ;;  %v933_v52 = vpop.f32.mrb[85].mxu0 }
 0x18e   : > { %v934_v55 = vadd.f32 %v933_v52, %v3436_v54  ;;  %v935_v56 = vpop.f32.mrb[86].mxu0  ;;  %1559 = vmatprep.mubr.bf16.mxu1 %v1209_v49 }
 0x18f   : > { %v936_v57 = vadd.f32 %v935_v56, %v3434_v53  ;;  %v937_v58 = vpop.f32.mrb[87].mxu0  ;;  %1560 = vmatmul.mubr.bf16.gmra.mrb[80].mxu1 %v1208_v48  ;;  %v1124_v60 = vmax.f32 %v932_v51, 0.0 }
 0x190   : > { %v938_v59 = vadd.f32 %v937_v58, %v3436_v54  ;;  %v1125_v62 = vmax.f32 %v934_v55, 0.0 }
 0x191   : > { %v1126_v61 = vmax.f32 %v936_v57, 0.0 }
 0x192   : > { %v1127_v63 = vmax.f32 %v938_v59, 0.0 }
 0x193   : > { %v1210_v0 = vpack.c.bf16 %v1126_v61, %v1124_v60 }
 0x194   : > { %v1211_v1 = vpack.c.bf16 %v1127_v63, %v1125_v62  ;;  %v941_v2 = vpop.f32.mrb[88].mxu0 }
 0x195   : > { %v942_v3 = vadd.f32 %v941_v2, %v3434_v53  ;;  %v943_v4 = vpop.f32.mrb[89].mxu0 }
 0x196   : > { %v944_v5 = vadd.f32 %v943_v4, %v3436_v54  ;;  %v945_v6 = vpop.f32.mrb[90].mxu0  ;;  %1567 = vmatprep.mubr.bf16.mxu1 %v1211_v1 }
 0x197   : > { %v946_v7 = vadd.f32 %v945_v6, %v3434_v53  ;;  %v947_v8 = vpop.f32.mrb[91].mxu0  ;;  %1568 = vmatmul.mubr.bf16.gmra.mrb[84].mxu1 %v1210_v0  ;;  %v1128_v10 = vmax.f32 %v942_v3, 0.0 }
 0x198   : > { %v948_v9 = vadd.f32 %v947_v8, %v3436_v54  ;;  %v1129_v12 = vmax.f32 %v944_v5, 0.0 }
 0x199   : > { %v1130_v11 = vmax.f32 %v946_v7, 0.0 }
 0x19a   : > { %v1131_v13 = vmax.f32 %v948_v9, 0.0 }
 0x19b   : > { %v1212_v14 = vpack.c.bf16 %v1130_v11, %v1128_v10 }
 0x19c   : > { %v1213_v15 = vpack.c.bf16 %v1131_v13, %v1129_v12  ;;  %v951_v16 = vpop.f32.mrb[92].mxu0 }
 0x19d   : > { %v952_v17 = vadd.f32 %v951_v16, %v3434_v53  ;;  %v953_v18 = vpop.f32.mrb[93].mxu0 }
 0x19e   : > { %v954_v19 = vadd.f32 %v953_v18, %v3436_v54  ;;  %v955_v20 = vpop.f32.mrb[94].mxu0  ;;  %1575 = vmatprep.mubr.bf16.mxu1 %v1213_v15 }
 0x19f   : > { %v956_v21 = vadd.f32 %v955_v20, %v3434_v53  ;;  %v957_v22 = vpop.f32.mrb[95].mxu0  ;;  %1576 = vmatmul.mubr.bf16.gmra.mrb[88].mxu1 %v1212_v14  ;;  %v1132_v24 = vmax.f32 %v952_v17, 0.0  ;;  %v3198_v17 = vld [vmem:[%s3997_s7] sm:$0xff]  }
 0x1a0   : > { %v958_v23 = vadd.f32 %v957_v22, %v3436_v54  ;;  %v1133_v26 = vmax.f32 %v954_v19, 0.0  ;;  %3122 = vmatprep.subr.bf16.mxu1 %v3198_v17  ;;  %3050 = vmatprep.subr.bf16.mxu0 %v3198_v17 }
 0x1a1   : > { %v1134_v25 = vmax.f32 %v956_v21, 0.0  ;;  %3126 = vmatpush3.bf16.msra.mxu1 %v3198_v17 }
 0x1a2   : > { %v1135_v27 = vmax.f32 %v958_v23, 0.0  ;;  %v3592_v23 = vld [vmem:[%s3994_s4] ss:$0 sm:$0xff] }
 0x1a3   : > { %v1214_v28 = vpack.c.bf16 %v1134_v25, %v1132_v24 }
 0x1a4   : > { %v1215_v29 = vpack.c.bf16 %v1135_v27, %v1133_v26  ;;  %v961_v30 = vpop.f32.mrb[96].mxu0 }
 0x1a5   : > { %v962_v31 = vadd.f32 %v961_v30, %v3434_v53  ;;  %v963_v32 = vpop.f32.mrb[97].mxu0 }
 0x1a6   : > { %v964_v33 = vadd.f32 %v963_v32, %v3436_v54  ;;  %v965_v34 = vpop.f32.mrb[98].mxu0  ;;  %1583 = vmatprep.mubr.bf16.mxu1 %v1215_v29 }
 0x1a7   : > { %v966_v35 = vadd.f32 %v965_v34, %v3434_v53  ;;  %v967_v36 = vpop.f32.mrb[99].mxu0  ;;  %1584 = vmatmul.mubr.bf16.gmra.mrb[92].mxu1 %v1214_v28  ;;  %v1136_v38 = vmax.f32 %v962_v31, 0.0 }
 0x1a8   : > { %v968_v37 = vadd.f32 %v967_v36, %v3436_v54  ;;  %v1137_v40 = vmax.f32 %v964_v33, 0.0 }
 0x1a9   : > { %v1138_v39 = vmax.f32 %v966_v35, 0.0 }
 0x1aa   : > { %v1139_v41 = vmax.f32 %v968_v37, 0.0 }
 0x1ab   : > { %v1216_v42 = vpack.c.bf16 %v1138_v39, %v1136_v38 }
 0x1ac   : > { %v1217_v43 = vpack.c.bf16 %v1139_v41, %v1137_v40  ;;  %v971_v44 = vpop.f32.mrb[100].mxu0 }
 0x1ad   : > { %v972_v45 = vadd.f32 %v971_v44, %v3434_v53  ;;  %v973_v46 = vpop.f32.mrb[101].mxu0 }
 0x1ae   : > { %v974_v47 = vadd.f32 %v973_v46, %v3436_v54  ;;  %v975_v48 = vpop.f32.mrb[102].mxu0  ;;  %1591 = vmatprep.mubr.bf16.mxu1 %v1217_v43 }
 0x1af   : > { %v976_v49 = vadd.f32 %v975_v48, %v3434_v53  ;;  %v977_v50 = vpop.f32.mrb[103].mxu0  ;;  %1592 = vmatmul.mubr.bf16.gmra.mrb[96].mxu1 %v1216_v42  ;;  %v1140_v52 = vmax.f32 %v972_v45, 0.0 }
 0x1b0   : > { %v978_v51 = vadd.f32 %v977_v50, %v3436_v54  ;;  %v1141_v56 = vmax.f32 %v974_v47, 0.0 }
 0x1b1   : > { %v1142_v55 = vmax.f32 %v976_v49, 0.0 }
 0x1b2   : > { %v1143_v57 = vmax.f32 %v978_v51, 0.0 }
 0x1b3   : > { %v1218_v58 = vpack.c.bf16 %v1142_v55, %v1140_v52 }
 0x1b4   : > { %v1219_v59 = vpack.c.bf16 %v1143_v57, %v1141_v56  ;;  %v981_v60 = vpop.f32.mrb[104].mxu0 }
 0x1b5   : > { %v982_v61 = vadd.f32 %v981_v60, %v3434_v53  ;;  %v983_v62 = vpop.f32.mrb[105].mxu0 }
 0x1b6   : > { %v984_v63 = vadd.f32 %v983_v62, %v3436_v54  ;;  %v985_v0 = vpop.f32.mrb[106].mxu0  ;;  %1599 = vmatprep.mubr.bf16.mxu1 %v1219_v59 }
 0x1b7   : > { %v986_v1 = vadd.f32 %v985_v0, %v3434_v53  ;;  %v987_v2 = vpop.f32.mrb[107].mxu0  ;;  %1600 = vmatmul.mubr.bf16.gmra.mrb[100].mxu1 %v1218_v58  ;;  %v1144_v4 = vmax.f32 %v982_v61, 0.0 }
 0x1b8   : > { %v988_v3 = vadd.f32 %v987_v2, %v3436_v54  ;;  %v1145_v6 = vmax.f32 %v984_v63, 0.0 }
 0x1b9   : > { %v1146_v5 = vmax.f32 %v986_v1, 0.0 }
 0x1ba   : > { %v1147_v7 = vmax.f32 %v988_v3, 0.0 }
 0x1bb   : > { %v1220_v8 = vpack.c.bf16 %v1146_v5, %v1144_v4 }
 0x1bc   : > { %v1221_v9 = vpack.c.bf16 %v1147_v7, %v1145_v6  ;;  %v991_v10 = vpop.f32.mrb[108].mxu0 }
 0x1bd   : > { %v992_v11 = vadd.f32 %v991_v10, %v3434_v53  ;;  %v993_v12 = vpop.f32.mrb[109].mxu0 }
 0x1be   : > { %v994_v13 = vadd.f32 %v993_v12, %v3436_v54  ;;  %v995_v14 = vpop.f32.mrb[110].mxu0  ;;  %1607 = vmatprep.mubr.bf16.mxu1 %v1221_v9 }
 0x1bf   : > { %v996_v15 = vadd.f32 %v995_v14, %v3434_v53  ;;  %v997_v16 = vpop.f32.mrb[111].mxu0  ;;  %1608 = vmatmul.mubr.bf16.gmra.mrb[104].mxu1 %v1220_v8  ;;  %v1148_v19 = vmax.f32 %v992_v11, 0.0 }
 0x1c0   : > { %v998_v18 = vadd.f32 %v997_v16, %v3436_v54  ;;  %v1149_v21 = vmax.f32 %v994_v13, 0.0 }
 0x1c1   : > { %v1150_v20 = vmax.f32 %v996_v15, 0.0 }
 0x1c2   : > { %v1151_v22 = vmax.f32 %v998_v18, 0.0  ;;  %v1401_v24 = vpop.f32.mrb[0].mxu1 }
 0x1c3   : > { %v1222_v25 = vpack.c.bf16 %v1150_v20, %v1148_v19  ;;  %v1403_v26 = vpop.f32.mrb[1].mxu1  ;;  %v1402_v30 = vadd.f32 %v3592_v23, %v1401_v24 }
 0x1c4   : > { %v1223_v27 = vpack.c.bf16 %v1151_v22, %v1149_v21  ;;  %v1001_v28 = vpop.f32.mrb[112].mxu0  ;;  %v1404_v29 = vpop.f32.mrb[2].mxu1 }
 0x1c5   : > { %v1002_v31 = vadd.f32 %v1001_v28, %v3434_v53  ;;  %v1405_v32 = vadd.f32 %v3592_v23, %v1404_v29  ;;  %v1003_v33 = vpop.f32.mrb[113].mxu0  ;;  %v1406_v34 = vpop.f32.mrb[3].mxu1 }
 0x1c6   : > { %v1004_v35 = vadd.f32 %v1003_v33, %v3436_v54  ;;  %v1005_v36 = vpop.f32.mrb[114].mxu0  ;;  %1615 = vmatprep.mubr.bf16.mxu1 %v1223_v27 }
 0x1c7   : > { %v1656_v37 = vpack.c.bf16 %v1405_v32, %v1402_v30  ;;  %v1006_v38 = vadd.f32 %v1005_v36, %v3434_v53  ;;  %v1007_v39 = vpop.f32.mrb[115].mxu0  ;;  %1616 = vmatmul.mubr.bf16.gmra.mrb[108].mxu1 %v1222_v25  ;;  %v1152_v41 = vmax.f32 %v1002_v31, 0.0 }
 0x1c8   : > { %v1008_v40 = vadd.f32 %v1007_v39, %v3436_v54  ;;  %v1153_v43 = vmax.f32 %v1004_v35, 0.0 }
 0x1c9   : > { %v1154_v42 = vmax.f32 %v1006_v38, 0.0  ;;  %2986 = vmatprep.mubr.bf16.mxu0 %v1656_v37 }
 0x1ca   : > { %v1155_v44 = vmax.f32 %v1008_v40, 0.0  ;;  %v1409_v45 = vpop.f32.mrb[4].mxu1 }
 0x1cb   : > { %v1224_v46 = vpack.c.bf16 %v1154_v42, %v1152_v41  ;;  %v1411_v47 = vpop.f32.mrb[5].mxu1  ;;  %v1410_v51 = vadd.f32 %v3592_v23, %v1409_v45 }
 0x1cc   : > { %v1225_v48 = vpack.c.bf16 %v1155_v44, %v1153_v43  ;;  %v1011_v49 = vpop.f32.mrb[116].mxu0  ;;  %v1412_v50 = vpop.f32.mrb[6].mxu1 }
 0x1cd   : > { %v1012_v52 = vadd.f32 %v1011_v49, %v3434_v53  ;;  %v1413_v55 = vadd.f32 %v3592_v23, %v1412_v50  ;;  %v1013_v56 = vpop.f32.mrb[117].mxu0  ;;  %v1414_v57 = vpop.f32.mrb[7].mxu1 }
 0x1ce   : > { %v1014_v58 = vadd.f32 %v1013_v56, %v3436_v54  ;;  %v1015_v59 = vpop.f32.mrb[118].mxu0  ;;  %1623 = vmatprep.mubr.bf16.mxu1 %v1225_v48 }
 0x1cf   : > { %v1657_v60 = vpack.c.bf16 %v1413_v55, %v1410_v51  ;;  %v1016_v61 = vadd.f32 %v1015_v59, %v3434_v53  ;;  %v1017_v62 = vpop.f32.mrb[119].mxu0  ;;  %1624 = vmatmul.mubr.bf16.gmra.mrb[112].mxu1 %v1224_v46  ;;  %v1156_v0 = vmax.f32 %v1012_v52, 0.0 }
 0x1d0   : > { %v1018_v63 = vadd.f32 %v1017_v62, %v3436_v54  ;;  %v1157_v2 = vmax.f32 %v1014_v58, 0.0 }
 0x1d1   : > { %v1158_v1 = vmax.f32 %v1016_v61, 0.0  ;;  %2987 = vmatmul.mubr.bf16.vlgmr.msra.gmra.mrb[128].mxu0 %v1657_v60 }
 0x1d2   : > { %v1159_v3 = vmax.f32 %v1018_v63, 0.0  ;;  %v1417_v4 = vpop.f32.mrb[8].mxu1  ;;  %3051 = vmatpush3.bf16.msra.mxu0 %v3198_v17 }
 0x1d3   : > { %v1226_v5 = vpack.c.bf16 %v1158_v1, %v1156_v0  ;;  %v1419_v6 = vpop.f32.mrb[9].mxu1  ;;  %v1418_v10 = vadd.f32 %v3592_v23, %v1417_v4 }
 0x1d4   : > { %v1227_v7 = vpack.c.bf16 %v1159_v3, %v1157_v2  ;;  %v1021_v8 = vpop.f32.mrb[120].mxu0  ;;  %v1420_v9 = vpop.f32.mrb[10].mxu1 }
 0x1d5   : > { %v1022_v11 = vadd.f32 %v1021_v8, %v3434_v53  ;;  %v1421_v12 = vadd.f32 %v3592_v23, %v1420_v9  ;;  %v1023_v13 = vpop.f32.mrb[121].mxu0  ;;  %v1422_v14 = vpop.f32.mrb[11].mxu1 }
 0x1d6   : > { %v1024_v15 = vadd.f32 %v1023_v13, %v3436_v54  ;;  %v1025_v16 = vpop.f32.mrb[122].mxu0  ;;  %1631 = vmatprep.mubr.bf16.mxu1 %v1227_v7  ;;  %v3199_v13 = vld [vmem:[%s3997_s7 + $0x8] sm:$0xff]  }
 0x1d7   : > { %v1658_v18 = vpack.c.bf16 %v1421_v12, %v1418_v10  ;;  %v1026_v17 = vadd.f32 %v1025_v16, %v3434_v53  ;;  %v1027_v19 = vpop.f32.mrb[123].mxu0  ;;  %1632 = vmatmul.mubr.bf16.gmra.mrb[116].mxu1 %v1226_v5  ;;  %v1160_v21 = vmax.f32 %v1022_v11, 0.0  ;;  %3123 = vmatprep.subr.bf16.mxu1 %v3199_v13 }
 0x1d8   : > { %v1028_v20 = vadd.f32 %v1027_v19, %v3436_v54  ;;  %v1161_v24 = vmax.f32 %v1024_v15, 0.0  ;;  %3127 = vmatpush3.bf16.msra.mxu1 %v3199_v13  ;;  %3052 = vmatprep.subr.bf16.mxu0 %v3199_v13 }
 0x1d9   : > { %v1162_v22 = vmax.f32 %v1026_v17, 0.0  ;;  %2990 = vmatprep.mubr.bf16.mxu0 %v1658_v18  ;;  %3053 = vmatpush3.bf16.msra.mxu0 %v3199_v13 }
 0x1da   : > { %v1163_v25 = vmax.f32 %v1028_v20, 0.0  ;;  %v1425_v26 = vpop.f32.mrb[12].mxu1 }
 0x1db   : > { %v1228_v27 = vpack.c.bf16 %v1162_v22, %v1160_v21  ;;  %v1427_v28 = vpop.f32.mrb[13].mxu1  ;;  %v1426_v32 = vadd.f32 %v3592_v23, %v1425_v26 }
 0x1dc   : > { %v1229_v29 = vpack.c.bf16 %v1163_v25, %v1161_v24  ;;  %v1031_v30 = vpop.f32.mrb[124].mxu0  ;;  %v1428_v31 = vpop.f32.mrb[14].mxu1 }
 0x1dd   : > { %v1032_v33 = vadd.f32 %v1031_v30, %v3434_v53  ;;  %v1429_v34 = vadd.f32 %v3592_v23, %v1428_v31  ;;  %v1033_v35 = vpop.f32.mrb[125].mxu0  ;;  %v1430_v36 = vpop.f32.mrb[15].mxu1 }
 0x1de   : > { %v1034_v37 = vadd.f32 %v1033_v35, %v3436_v54  ;;  %v1035_v38 = vpop.f32.mrb[126].mxu0  ;;  %1639 = vmatprep.mubr.bf16.mxu1 %v1229_v29 }
 0x1df   : > { %v1659_v39 = vpack.c.bf16 %v1429_v34, %v1426_v32  ;;  %v1036_v40 = vadd.f32 %v1035_v38, %v3434_v53  ;;  %v1037_v41 = vpop.f32.mrb[127].mxu0  ;;  %1640 = vmatmul.mubr.bf16.gmra.mrb[120].mxu1 %v1228_v27  ;;  %v1164_v43 = vmax.f32 %v1032_v33, 0.0 }
 0x1e0   : > { %v1038_v42 = vadd.f32 %v1037_v41, %v3436_v54  ;;  %v1165_v45 = vmax.f32 %v1034_v37, 0.0 }
 0x1e1   : > { %v1166_v44 = vmax.f32 %v1036_v40, 0.0  ;;  %2991 = vmatmul.mubr.bf16.gmra.mrb[132].mxu0 %v1659_v39 }
 0x1e2   : > { %v1167_v46 = vmax.f32 %v1038_v42, 0.0  ;;  %v1433_v47 = vpop.f32.mrb[16].mxu1 }
 0x1e3   : > { %v1230_v48 = vpack.c.bf16 %v1166_v44, %v1164_v43  ;;  %v1435_v49 = vpop.f32.mrb[17].mxu1  ;;  %v1434_v52 = vadd.f32 %v3592_v23, %v1433_v47 }
 0x1e4   : > { %v1231_v50 = vpack.c.bf16 %v1167_v46, %v1165_v45  ;;  %v1436_v51 = vpop.f32.mrb[18].mxu1 }
 0x1e5   : > { %v1437_v55 = vadd.f32 %v3592_v23, %v1436_v51  ;;  %v1438_v56 = vpop.f32.mrb[19].mxu1 }
 0x1e6   : > { %1647 = vmatprep.mubr.bf16.mxu1 %v1231_v50 }
 0x1e7   : > { %v1660_v53 = vpack.c.bf16 %v1437_v55, %v1434_v52  ;;  %1648 = vmatmul.mubr.bf16.gmra.mrb[124].mxu1 %v1230_v48 }
 0x1e9   : > { %2994 = vmatprep.mubr.bf16.mxu0 %v1660_v53 }
 0x1ea   : > { %v1441_v54 = vpop.f32.mrb[20].mxu1 }
 0x1eb   : > { %v1443_v57 = vpop.f32.mrb[21].mxu1  ;;  %v1442_v59 = vadd.f32 %v3592_v23, %v1441_v54 }
 0x1ec   : > { %v1444_v58 = vpop.f32.mrb[22].mxu1 }
 0x1ed   : > { %v1445_v60 = vadd.f32 %v3592_v23, %v1444_v58  ;;  %v1446_v61 = vpop.f32.mrb[23].mxu1 }
 0x1ef   : > { %v1661_v62 = vpack.c.bf16 %v1445_v60, %v1442_v59 }
 0x1f1   : > { %2995 = vmatmul.mubr.bf16.gmra.mrb[136].mxu0 %v1661_v62 }
 0x1f2   : > { %v1449_v63 = vpop.f32.mrb[24].mxu1 }
 0x1f3   : > { %v1451_v0 = vpop.f32.mrb[25].mxu1  ;;  %v1450_v2 = vadd.f32 %v3592_v23, %v1449_v63 }
 0x1f4   : > { %v1452_v1 = vpop.f32.mrb[26].mxu1 }
 0x1f5   : > { %v1453_v3 = vadd.f32 %v3592_v23, %v1452_v1  ;;  %v1454_v4 = vpop.f32.mrb[27].mxu1 }
 0x1f7   : > { %v1662_v5 = vpack.c.bf16 %v1453_v3, %v1450_v2 }
 0x1f9   : > { %2998 = vmatprep.mubr.bf16.mxu0 %v1662_v5 }
 0x1fa   : > { %v1457_v6 = vpop.f32.mrb[28].mxu1 }
 0x1fb   : > { %v1459_v7 = vpop.f32.mrb[29].mxu1  ;;  %v1458_v9 = vadd.f32 %v3592_v23, %v1457_v6 }
 0x1fc   : > { %v1460_v8 = vpop.f32.mrb[30].mxu1  ;;  %v3200_v7 = vld [vmem:[%s3997_s7 + $0x10] sm:$0xff]  }
 0x1fd   : > { %v1461_v10 = vadd.f32 %v3592_v23, %v1460_v8  ;;  %v1462_v11 = vpop.f32.mrb[31].mxu1  ;;  %3124 = vmatprep.subr.bf16.mxu1 %v3200_v7  ;;  %3054 = vmatprep.subr.bf16.mxu0 %v3200_v7 }
 0x1fe   : > { %3128 = vmatpush3.bf16.msra.mxu1 %v3200_v7  ;;  %3055 = vmatpush3.bf16.msra.mxu0 %v3200_v7 }
 0x1ff   : > { %v1663_v12 = vpack.c.bf16 %v1461_v10, %v1458_v9  ;;  %v3201_v10 = vld [vmem:[%s3997_s7 + $0x18] sm:$0xff]  }
 0x200   : > { %3056 = vmatprep.subr.bf16.mxu0 %v3201_v10  ;;  %3125 = vmatprep.subr.bf16.mxu1 %v3201_v10 }
 0x201   : > { %2999 = vmatmul.mubr.bf16.gmra.mrb[140].mxu0 %v1663_v12 }
 0x202   : > { %v1465_v14 = vpop.f32.mrb[32].mxu1  ;;  %3129 = vmatpush3.bf16.msra.mxu1 %v3201_v10  ;;  %3057 = vmatpush3.bf16.msra.mxu0 %v3201_v10 }
 0x203   : > { %v1467_v15 = vpop.f32.mrb[33].mxu1  ;;  %v1466_v18 = vadd.f32 %v3592_v23, %v1465_v14 }
 0x204   : > { %v1468_v16 = vpop.f32.mrb[34].mxu1 }
 0x205   : > { %v1469_v17 = vadd.f32 %v3592_v23, %v1468_v16  ;;  %v1470_v19 = vpop.f32.mrb[35].mxu1 }
 0x207   : > { %v1664_v20 = vpack.c.bf16 %v1469_v17, %v1466_v18 }
 0x209   : > { %3002 = vmatprep.mubr.bf16.mxu0 %v1664_v20 }
 0x20a   : > { %v1473_v21 = vpop.f32.mrb[36].mxu1 }
 0x20b   : > { %v1475_v22 = vpop.f32.mrb[37].mxu1  ;;  %v1474_v25 = vadd.f32 %v3592_v23, %v1473_v21 }
 0x20c   : > { %v1476_v24 = vpop.f32.mrb[38].mxu1 }
 0x20d   : > { %v1477_v26 = vadd.f32 %v3592_v23, %v1476_v24  ;;  %v1478_v27 = vpop.f32.mrb[39].mxu1 }
 0x20f   : > { %v1665_v28 = vpack.c.bf16 %v1477_v26, %v1474_v25 }
 0x211   : > { %3003 = vmatmul.mubr.bf16.gmra.mrb[144].mxu0 %v1665_v28 }
 0x212   : > { %v1481_v29 = vpop.f32.mrb[40].mxu1 }
 0x213   : > { %v1483_v30 = vpop.f32.mrb[41].mxu1  ;;  %v1482_v32 = vadd.f32 %v3592_v23, %v1481_v29 }
 0x214   : > { %v1484_v31 = vpop.f32.mrb[42].mxu1 }
 0x215   : > { %v1485_v33 = vadd.f32 %v3592_v23, %v1484_v31  ;;  %v1486_v34 = vpop.f32.mrb[43].mxu1 }
 0x217   : > { %v1666_v35 = vpack.c.bf16 %v1485_v33, %v1482_v32 }
 0x219   : > { %3006 = vmatprep.mubr.bf16.mxu0 %v1666_v35 }
 0x21a   : > { %v1489_v36 = vpop.f32.mrb[44].mxu1 }
 0x21b   : > { %v1491_v37 = vpop.f32.mrb[45].mxu1  ;;  %v1490_v39 = vadd.f32 %v3592_v23, %v1489_v36 }
 0x21c   : > { %v1492_v38 = vpop.f32.mrb[46].mxu1 }
 0x21d   : > { %v1493_v40 = vadd.f32 %v3592_v23, %v1492_v38  ;;  %v1494_v41 = vpop.f32.mrb[47].mxu1 }
 0x21f   : > { %v1667_v42 = vpack.c.bf16 %v1493_v40, %v1490_v39 }
 0x221   : > { %3007 = vmatmul.mubr.bf16.gmra.mrb[148].mxu0 %v1667_v42 }
 0x222   : > { %v1497_v43 = vpop.f32.mrb[48].mxu1 }
 0x223   : > { %v1499_v44 = vpop.f32.mrb[49].mxu1  ;;  %v1498_v46 = vadd.f32 %v3592_v23, %v1497_v43 }
 0x224   : > { %v1500_v45 = vpop.f32.mrb[50].mxu1 }
 0x225   : > { %v1501_v47 = vadd.f32 %v3592_v23, %v1500_v45  ;;  %v1502_v48 = vpop.f32.mrb[51].mxu1 }
 0x227   : > { %v1668_v49 = vpack.c.bf16 %v1501_v47, %v1498_v46 }
 0x229   : > { %3010 = vmatprep.mubr.bf16.mxu0 %v1668_v49 }
 0x22a   : > { %v1505_v50 = vpop.f32.mrb[52].mxu1 }
 0x22b   : > { %v1507_v51 = vpop.f32.mrb[53].mxu1  ;;  %v1506_v55 = vadd.f32 %v3592_v23, %v1505_v50 }
 0x22c   : > { %v1508_v52 = vpop.f32.mrb[54].mxu1 }
 0x22d   : > { %v1509_v56 = vadd.f32 %v3592_v23, %v1508_v52  ;;  %v1510_v53 = vpop.f32.mrb[55].mxu1 }
 0x22f   : > { %v1669_v54 = vpack.c.bf16 %v1509_v56, %v1506_v55 }
 0x231   : > { %3011 = vmatmul.mubr.bf16.gmra.mrb[152].mxu0 %v1669_v54 }
 0x232   : > { %v1513_v57 = vpop.f32.mrb[56].mxu1 }
 0x233   : > { %v1515_v58 = vpop.f32.mrb[57].mxu1  ;;  %v1514_v60 = vadd.f32 %v3592_v23, %v1513_v57 }
 0x234   : > { %v1516_v59 = vpop.f32.mrb[58].mxu1 }
 0x235   : > { %v1517_v61 = vadd.f32 %v3592_v23, %v1516_v59  ;;  %v1518_v62 = vpop.f32.mrb[59].mxu1 }
 0x237   : > { %v1670_v63 = vpack.c.bf16 %v1517_v61, %v1514_v60 }
 0x239   : > { %3014 = vmatprep.mubr.bf16.mxu0 %v1670_v63 }
 0x23a   : > { %v1521_v0 = vpop.f32.mrb[60].mxu1 }
 0x23b   : > { %v1523_v1 = vpop.f32.mrb[61].mxu1  ;;  %v1522_v3 = vadd.f32 %v3592_v23, %v1521_v0 }
 0x23c   : > { %v1524_v2 = vpop.f32.mrb[62].mxu1 }
 0x23d   : > { %v1525_v4 = vadd.f32 %v3592_v23, %v1524_v2  ;;  %v1526_v5 = vpop.f32.mrb[63].mxu1 }
 0x23f   : > { %v1671_v6 = vpack.c.bf16 %v1525_v4, %v1522_v3 }
 0x241   : > { %3015 = vmatmul.mubr.bf16.gmra.mrb[156].mxu0 %v1671_v6 }
 0x242   : > { %v1529_v8 = vpop.f32.mrb[64].mxu1 }
 0x243   : > { %v1531_v9 = vpop.f32.mrb[65].mxu1  ;;  %v1530_v12 = vadd.f32 %v3592_v23, %v1529_v8 }
 0x244   : > { %v1532_v11 = vpop.f32.mrb[66].mxu1 }
 0x245   : > { %v1533_v13 = vadd.f32 %v3592_v23, %v1532_v11  ;;  %v1534_v14 = vpop.f32.mrb[67].mxu1 }
 0x247   : > { %v1672_v15 = vpack.c.bf16 %v1533_v13, %v1530_v12 }
 0x249   : > { %3018 = vmatprep.mubr.bf16.mxu0 %v1672_v15 }
 0x24a   : > { %v1537_v16 = vpop.f32.mrb[68].mxu1 }
 0x24b   : > { %v1539_v18 = vpop.f32.mrb[69].mxu1  ;;  %v1538_v19 = vadd.f32 %v3592_v23, %v1537_v16 }
 0x24c   : > { %v1540_v17 = vpop.f32.mrb[70].mxu1 }
 0x24d   : > { %v1541_v20 = vadd.f32 %v3592_v23, %v1540_v17  ;;  %v1542_v21 = vpop.f32.mrb[71].mxu1 }
 0x24f   : > { %v1673_v22 = vpack.c.bf16 %v1541_v20, %v1538_v19 }
 0x251   : > { %3019 = vmatmul.mubr.bf16.gmra.mrb[160].mxu0 %v1673_v22 }
 0x252   : > { %v1545_v24 = vpop.f32.mrb[72].mxu1 }
 0x253   : > { %v1547_v25 = vpop.f32.mrb[73].mxu1  ;;  %v1546_v27 = vadd.f32 %v3592_v23, %v1545_v24 }
 0x254   : > { %v1548_v26 = vpop.f32.mrb[74].mxu1 }
 0x255   : > { %v1549_v28 = vadd.f32 %v3592_v23, %v1548_v26  ;;  %v1550_v29 = vpop.f32.mrb[75].mxu1 }
 0x257   : > { %v1674_v30 = vpack.c.bf16 %v1549_v28, %v1546_v27 }
 0x259   : > { %3022 = vmatprep.mubr.bf16.mxu0 %v1674_v30 }
 0x25a   : > { %v1553_v31 = vpop.f32.mrb[76].mxu1 }
 0x25b   : > { %v1555_v32 = vpop.f32.mrb[77].mxu1  ;;  %v1554_v34 = vadd.f32 %v3592_v23, %v1553_v31 }
 0x25c   : > { %v1556_v33 = vpop.f32.mrb[78].mxu1  ;;  %v3678_v32 = vld [vmem:[%s3996_s6] ss:$0 sm:$0xff] }
 0x25d   : > { %v1557_v35 = vadd.f32 %v3592_v23, %v1556_v33  ;;  %v1558_v36 = vpop.f32.mrb[79].mxu1 }
 0x25f   : > { %v1675_v37 = vpack.c.bf16 %v1557_v35, %v1554_v34 }
 0x261   : > { %3023 = vmatmul.mubr.bf16.gmra.mrb[164].mxu0 %v1675_v37 }
 0x262   : > { %v1561_v38 = vpop.f32.mrb[80].mxu1 }
 0x263   : > { %v1563_v39 = vpop.f32.mrb[81].mxu1  ;;  %v1562_v41 = vadd.f32 %v3592_v23, %v1561_v38 }
 0x264   : > { %v1564_v40 = vpop.f32.mrb[82].mxu1 }
 0x265   : > { %v1565_v42 = vadd.f32 %v3592_v23, %v1564_v40  ;;  %v1566_v43 = vpop.f32.mrb[83].mxu1 }
 0x267   : > { %v1676_v44 = vpack.c.bf16 %v1565_v42, %v1562_v41 }
 0x269   : > { %3026 = vmatprep.mubr.bf16.mxu0 %v1676_v44 }
 0x26a   : > { %v1569_v45 = vpop.f32.mrb[84].mxu1 }
 0x26b   : > { %v1571_v46 = vpop.f32.mrb[85].mxu1  ;;  %v1570_v48 = vadd.f32 %v3592_v23, %v1569_v45 }
 0x26c   : > { %v1572_v47 = vpop.f32.mrb[86].mxu1 }
 0x26d   : > { %v1573_v49 = vadd.f32 %v3592_v23, %v1572_v47  ;;  %v1574_v50 = vpop.f32.mrb[87].mxu1 }
 0x26f   : > { %v1677_v51 = vpack.c.bf16 %v1573_v49, %v1570_v48 }
 0x271   : > { %3027 = vmatmul.mubr.bf16.gmra.mrb[168].mxu0 %v1677_v51 }
 0x272   : > { %v1577_v52 = vpop.f32.mrb[88].mxu1 }
 0x273   : > { %v1579_v55 = vpop.f32.mrb[89].mxu1  ;;  %v1578_v53 = vadd.f32 %v3592_v23, %v1577_v52 }
 0x274   : > { %v1580_v56 = vpop.f32.mrb[90].mxu1 }
 0x275   : > { %v1581_v54 = vadd.f32 %v3592_v23, %v1580_v56  ;;  %v1582_v57 = vpop.f32.mrb[91].mxu1 }
 0x277   : > { %v1678_v58 = vpack.c.bf16 %v1581_v54, %v1578_v53 }
 0x279   : > { %3030 = vmatprep.mubr.bf16.mxu0 %v1678_v58 }
 0x27a   : > { %v1585_v59 = vpop.f32.mrb[92].mxu1 }
 0x27b   : > { %v1587_v60 = vpop.f32.mrb[93].mxu1  ;;  %v1586_v62 = vadd.f32 %v3592_v23, %v1585_v59 }
 0x27c   : > { %v1588_v61 = vpop.f32.mrb[94].mxu1 }
 0x27d   : > { %v1589_v63 = vadd.f32 %v3592_v23, %v1588_v61  ;;  %v1590_v0 = vpop.f32.mrb[95].mxu1 }
 0x27f   : > { %v1679_v1 = vpack.c.bf16 %v1589_v63, %v1586_v62 }
 0x281   : > { %3031 = vmatmul.mubr.bf16.gmra.mrb[172].mxu0 %v1679_v1 }
 0x282   : > { %v1593_v2 = vpop.f32.mrb[96].mxu1 }
 0x283   : > { %v1595_v3 = vpop.f32.mrb[97].mxu1  ;;  %v1594_v5 = vadd.f32 %v3592_v23, %v1593_v2 }
 0x284   : > { %v1596_v4 = vpop.f32.mrb[98].mxu1 }
 0x285   : > { %v1597_v6 = vadd.f32 %v3592_v23, %v1596_v4  ;;  %v1598_v7 = vpop.f32.mrb[99].mxu1 }
 0x287   : > { %v1680_v8 = vpack.c.bf16 %v1597_v6, %v1594_v5 }
 0x289   : > { %3034 = vmatprep.mubr.bf16.mxu0 %v1680_v8 }
 0x28a   : > { %v1601_v9 = vpop.f32.mrb[100].mxu1 }
 0x28b   : > { %v1603_v10 = vpop.f32.mrb[101].mxu1  ;;  %v1602_v12 = vadd.f32 %v3592_v23, %v1601_v9 }
 0x28c   : > { %v1604_v11 = vpop.f32.mrb[102].mxu1 }
 0x28d   : > { %v1605_v13 = vadd.f32 %v3592_v23, %v1604_v11  ;;  %v1606_v14 = vpop.f32.mrb[103].mxu1 }
 0x28f   : > { %v1681_v15 = vpack.c.bf16 %v1605_v13, %v1602_v12 }
 0x291   : > { %3035 = vmatmul.mubr.bf16.gmra.mrb[176].mxu0 %v1681_v15 }
 0x292   : > { %v1609_v16 = vpop.f32.mrb[104].mxu1 }
 0x293   : > { %v1611_v18 = vpop.f32.mrb[105].mxu1  ;;  %v1610_v19 = vadd.f32 %v3592_v23, %v1609_v16 }
 0x294   : > { %v1612_v17 = vpop.f32.mrb[106].mxu1 }
 0x295   : > { %v1613_v20 = vadd.f32 %v3592_v23, %v1612_v17  ;;  %v1614_v21 = vpop.f32.mrb[107].mxu1 }
 0x297   : > { %v1682_v22 = vpack.c.bf16 %v1613_v20, %v1610_v19 }
 0x299   : > { %3038 = vmatprep.mubr.bf16.mxu0 %v1682_v22 }
 0x29a   : > { %v1617_v24 = vpop.f32.mrb[108].mxu1 }
 0x29b   : > { %v1619_v25 = vpop.f32.mrb[109].mxu1  ;;  %v1618_v27 = vadd.f32 %v3592_v23, %v1617_v24 }
 0x29c   : > { %v1620_v26 = vpop.f32.mrb[110].mxu1 }
 0x29d   : > { %v1621_v28 = vadd.f32 %v3592_v23, %v1620_v26  ;;  %v1622_v29 = vpop.f32.mrb[111].mxu1 }
 0x29f   : > { %v1683_v30 = vpack.c.bf16 %v1621_v28, %v1618_v27 }
 0x2a1   : > { %3039 = vmatmul.mubr.bf16.gmra.mrb[180].mxu0 %v1683_v30 }
 0x2a2   : > { %v1625_v31 = vpop.f32.mrb[112].mxu1 }
 0x2a3   : > { %v1627_v33 = vpop.f32.mrb[113].mxu1  ;;  %v1626_v36 = vadd.f32 %v3592_v23, %v1625_v31 }
 0x2a4   : > { %v1628_v34 = vpop.f32.mrb[114].mxu1  ;;  %v2988_v35 = vpop.f32.mrb[128].mxu0 }
 0x2a5   : > { %v1629_v37 = vadd.f32 %v3592_v23, %v1628_v34  ;;  %v1802_v38 = vadd.f32 %v2988_v35, %v3678_v32  ;;  %v1630_v39 = vpop.f32.mrb[115].mxu1  ;;  %v1793_v40 = vpop.f32.mrb[129].mxu0 }
 0x2a6   : > { %v1794_v41 = vadd.f32 %v3678_v32, %v1793_v40  ;;  %v2989_v42 = vpop.f32.mrb[130].mxu0 }
 0x2a7   : > { %v1684_v43 = vpack.c.bf16 %v1629_v37, %v1626_v36  ;;  %v1805_v44 = vadd.f32 %v2989_v42, %v3678_v32  ;;  %v1796_v45 = vpop.f32.mrb[131].mxu0  ;;  %v2050_v47 = vmax.f32 %v1802_v38, 0.0 }
 0x2a8   : > { %v1797_v46 = vadd.f32 %v3678_v32, %v1796_v45  ;;  %v2048_v49 = vmax.f32 %v1794_v41, 0.0 }
 0x2a9   : > { %v2051_v48 = vmax.f32 %v1805_v44, 0.0  ;;  %3042 = vmatprep.mubr.bf16.mxu0 %v1684_v43 }
 0x2aa   : > { %v2049_v50 = vmax.f32 %v1797_v46, 0.0  ;;  %v1633_v51 = vpop.f32.mrb[116].mxu1 }
 0x2ab   : > { %v2113_v52 = vpack.c.bf16 %v2051_v48, %v2050_v47  ;;  %v1635_v55 = vpop.f32.mrb[117].mxu1  ;;  %v1634_v54 = vadd.f32 %v3592_v23, %v1633_v51 }
 0x2ac   : > { %v2112_v56 = vpack.c.bf16 %v2049_v50, %v2048_v49  ;;  %v1636_v53 = vpop.f32.mrb[118].mxu1 }
 0x2ad   : > { %v1637_v57 = vadd.f32 %v3592_v23, %v1636_v53  ;;  %v1638_v58 = vpop.f32.mrb[119].mxu1 }
 0x2af   : > { %v1685_v59 = vpack.c.bf16 %v1637_v57, %v1634_v54 }
 0x2b1   : > { %3043 = vmatmul.mubr.bf16.gmra.mrb[184].mxu0 %v1685_v59 }
 0x2b2   : > { %v1641_v60 = vpop.f32.mrb[120].mxu1 }
 0x2b3   : > { %v1643_v61 = vpop.f32.mrb[121].mxu1  ;;  %v1642_v0 = vadd.f32 %v3592_v23, %v1641_v60 }
 0x2b4   : > { %v1644_v62 = vpop.f32.mrb[122].mxu1  ;;  %v2992_v63 = vpop.f32.mrb[132].mxu0 }
 0x2b5   : > { %v1645_v1 = vadd.f32 %v3592_v23, %v1644_v62  ;;  %v1818_v2 = vadd.f32 %v2992_v63, %v3678_v32  ;;  %v1646_v3 = vpop.f32.mrb[123].mxu1  ;;  %v1809_v4 = vpop.f32.mrb[133].mxu0 }
 0x2b6   : > { %v1810_v5 = vadd.f32 %v3678_v32, %v1809_v4  ;;  %v2993_v6 = vpop.f32.mrb[134].mxu0 }
 0x2b7   : > { %v1686_v7 = vpack.c.bf16 %v1645_v1, %v1642_v0  ;;  %v1821_v8 = vadd.f32 %v2993_v6, %v3678_v32  ;;  %v1812_v9 = vpop.f32.mrb[135].mxu0  ;;  %v2054_v11 = vmax.f32 %v1818_v2, 0.0 }
 0x2b8   : > { %v1813_v10 = vadd.f32 %v3678_v32, %v1812_v9  ;;  %v2052_v13 = vmax.f32 %v1810_v5, 0.0 }
 0x2b9   : > { %v2055_v12 = vmax.f32 %v1821_v8, 0.0  ;;  %3046 = vmatprep.mubr.bf16.mxu0 %v1686_v7 }
 0x2ba   : > { %v2053_v14 = vmax.f32 %v1813_v10, 0.0  ;;  %v1649_v15 = vpop.f32.mrb[124].mxu1 }
 0x2bb   : > { %v2115_v16 = vpack.c.bf16 %v2055_v12, %v2054_v11  ;;  %v1651_v18 = vpop.f32.mrb[125].mxu1  ;;  %v1650_v20 = vadd.f32 %v3592_v23, %v1649_v15 }
 0x2bc   : > { %v2114_v17 = vpack.c.bf16 %v2053_v14, %v2052_v13  ;;  %v1652_v19 = vpop.f32.mrb[126].mxu1 }
 0x2bd   : > { %v1653_v21 = vadd.f32 %v3592_v23, %v1652_v19  ;;  %v1654_v22 = vpop.f32.mrb[127].mxu1 }
 0x2bf   : > { %v1687_v24 = vpack.c.bf16 %v1653_v21, %v1650_v20 }
 0x2c1   : > { %3047 = vmatmul.mubr.bf16.gmra.mrb[188].mxu0 %v1687_v24 }
 0x2c2   : > { %3058 = vmatprep.mubr.msk.bf16.mxu0 %vm2183_vm2, %v2112_v56 }
 0x2c4   : > { %v2996_v25 = vpop.f32.mrb[136].mxu0 }
 0x2c5   : > { %v1834_v26 = vadd.f32 %v2996_v25, %v3678_v32  ;;  %v1825_v27 = vpop.f32.mrb[137].mxu0 }
 0x2c6   : > { %v1826_v28 = vadd.f32 %v3678_v32, %v1825_v27  ;;  %v2997_v29 = vpop.f32.mrb[138].mxu0 }
 0x2c7   : > { %v1837_v30 = vadd.f32 %v2997_v29, %v3678_v32  ;;  %v1828_v31 = vpop.f32.mrb[139].mxu0  ;;  %v2058_v34 = vmax.f32 %v1834_v26, 0.0 }
 0x2c8   : > { %v1829_v33 = vadd.f32 %v3678_v32, %v1828_v31  ;;  %v2056_v35 = vmax.f32 %v1826_v28, 0.0 }
 0x2c9   : > { %v2059_v23 = vmax.f32 %v1837_v30, 0.0  ;;  %3059 = vmatmul.mubr.msk.bf16.vlgmr.msra.gmra.mrb[192].mxu0 %vm2183_vm2, %v2113_v52 }
 0x2ca   : > { %v2057_v36 = vmax.f32 %v1829_v33, 0.0  ;;  %3062 = vmatprep.mubr.msk.bf16.mxu0 %vm2183_vm2, %v2114_v17 }
 0x2cb   : > { %v2117_v37 = vpack.c.bf16 %v2059_v23, %v2058_v34 }
 0x2cc   : > { %v2116_v38 = vpack.c.bf16 %v2057_v36, %v2056_v35 }
 0x2d1   : > { %3063 = vmatmul.mubr.msk.bf16.gmra.mrb[196].mxu0 %vm2183_vm2, %v2115_v16 }
 0x2d2   : > { %3066 = vmatprep.mubr.msk.bf16.mxu0 %vm2183_vm2, %v2116_v38 }
 0x2d4   : > { %v3000_v39 = vpop.f32.mrb[140].mxu0 }
 0x2d5   : > { %v1850_v40 = vadd.f32 %v3000_v39, %v3678_v32  ;;  %v1841_v41 = vpop.f32.mrb[141].mxu0 }
 0x2d6   : > { %v1842_v42 = vadd.f32 %v3678_v32, %v1841_v41  ;;  %v3001_v43 = vpop.f32.mrb[142].mxu0 }
 0x2d7   : > { %v1853_v44 = vadd.f32 %v3001_v43, %v3678_v32  ;;  %v1844_v45 = vpop.f32.mrb[143].mxu0  ;;  %v2062_v47 = vmax.f32 %v1850_v40, 0.0 }
 0x2d8   : > { %v1845_v46 = vadd.f32 %v3678_v32, %v1844_v45  ;;  %v2060_v49 = vmax.f32 %v1842_v42, 0.0 }
 0x2d9   : > { %v2063_v48 = vmax.f32 %v1853_v44, 0.0  ;;  %3067 = vmatmul.mubr.msk.bf16.gmra.mrb[200].mxu0 %vm2183_vm2, %v2117_v37 }
 0x2da   : > { %v2061_v50 = vmax.f32 %v1845_v46, 0.0 }
 0x2db   : > { %v2119_v51 = vpack.c.bf16 %v2063_v48, %v2062_v47 }
 0x2dc   : > { %v2118_v52 = vpack.c.bf16 %v2061_v50, %v2060_v49 }
 0x2de   : > { %3070 = vmatprep.mubr.msk.bf16.mxu1 %vm2183_vm2, %v2118_v52 }
 0x2df   : > { %3071 = vmatmul.mubr.msk.bf16.vlgmr.msra.gmra.mrb[128].mxu1 %vm2183_vm2, %v2119_v51 }
 0x2e4   : > { %v3004_v55 = vpop.f32.mrb[144].mxu0 }
 0x2e5   : > { %v1866_v56 = vadd.f32 %v3004_v55, %v3678_v32  ;;  %v1857_v53 = vpop.f32.mrb[145].mxu0 }
 0x2e6   : > { %v1858_v54 = vadd.f32 %v3678_v32, %v1857_v53  ;;  %v3005_v57 = vpop.f32.mrb[146].mxu0 }
 0x2e7   : > { %v1869_v58 = vadd.f32 %v3005_v57, %v3678_v32  ;;  %v1860_v59 = vpop.f32.mrb[147].mxu0  ;;  %v2066_v61 = vmax.f32 %v1866_v56, 0.0 }
 0x2e8   : > { %v1861_v60 = vadd.f32 %v3678_v32, %v1860_v59  ;;  %v2064_v63 = vmax.f32 %v1858_v54, 0.0 }
 0x2e9   : > { %v2067_v62 = vmax.f32 %v1869_v58, 0.0 }
 0x2ea   : > { %v2065_v0 = vmax.f32 %v1861_v60, 0.0 }
 0x2eb   : > { %v2121_v1 = vpack.c.bf16 %v2067_v62, %v2066_v61 }
 0x2ec   : > { %v2120_v2 = vpack.c.bf16 %v2065_v0, %v2064_v63 }
 0x2ee   : > { %3074 = vmatprep.mubr.msk.bf16.mxu1 %vm2183_vm2, %v2120_v2 }
 0x2ef   : > { %3075 = vmatmul.mubr.msk.bf16.gmra.mrb[132].mxu1 %vm2183_vm2, %v2121_v1 }
 0x2f4   : > { %v3008_v3 = vpop.f32.mrb[148].mxu0 }
 0x2f5   : > { %v1882_v4 = vadd.f32 %v3008_v3, %v3678_v32  ;;  %v1873_v5 = vpop.f32.mrb[149].mxu0 }
 0x2f6   : > { %v1874_v6 = vadd.f32 %v3678_v32, %v1873_v5  ;;  %v3009_v7 = vpop.f32.mrb[150].mxu0 }
 0x2f7   : > { %v1885_v8 = vadd.f32 %v3009_v7, %v3678_v32  ;;  %v1876_v9 = vpop.f32.mrb[151].mxu0  ;;  %v2070_v11 = vmax.f32 %v1882_v4, 0.0 }
 0x2f8   : > { %v1877_v10 = vadd.f32 %v3678_v32, %v1876_v9  ;;  %v2068_v13 = vmax.f32 %v1874_v6, 0.0 }
 0x2f9   : > { %v2071_v12 = vmax.f32 %v1885_v8, 0.0 }
 0x2fa   : > { %v2069_v14 = vmax.f32 %v1877_v10, 0.0 }
 0x2fb   : > { %v2123_v15 = vpack.c.bf16 %v2071_v12, %v2070_v11 }
 0x2fc   : > { %v2122_v16 = vpack.c.bf16 %v2069_v14, %v2068_v13 }
 0x2fe   : > { %3078 = vmatprep.mubr.msk.bf16.mxu1 %vm2183_vm2, %v2122_v16 }
 0x2ff   : > { %3079 = vmatmul.mubr.msk.bf16.gmra.mrb[136].mxu1 %vm2183_vm2, %v2123_v15 }
 0x304   : > { %v3012_v18 = vpop.f32.mrb[152].mxu0 }
 0x305   : > { %v1898_v17 = vadd.f32 %v3012_v18, %v3678_v32  ;;  %v1889_v19 = vpop.f32.mrb[153].mxu0 }
 0x306   : > { %v1890_v20 = vadd.f32 %v3678_v32, %v1889_v19  ;;  %v3013_v21 = vpop.f32.mrb[154].mxu0 }
 0x307   : > { %v1901_v22 = vadd.f32 %v3013_v21, %v3678_v32  ;;  %v1892_v24 = vpop.f32.mrb[155].mxu0  ;;  %v2074_v26 = vmax.f32 %v1898_v17, 0.0 }
 0x308   : > { %v1893_v25 = vadd.f32 %v3678_v32, %v1892_v24  ;;  %v2072_v28 = vmax.f32 %v1890_v20, 0.0 }
 0x309   : > { %v2075_v27 = vmax.f32 %v1901_v22, 0.0 }
 0x30a   : > { %v2073_v29 = vmax.f32 %v1893_v25, 0.0 }
 0x30b   : > { %v2125_v30 = vpack.c.bf16 %v2075_v27, %v2074_v26 }
 0x30c   : > { %v2124_v31 = vpack.c.bf16 %v2073_v29, %v2072_v28 }
 0x30e   : > { %3082 = vmatprep.mubr.msk.bf16.mxu1 %vm2183_vm2, %v2124_v31 }
 0x30f   : > { %3083 = vmatmul.mubr.msk.bf16.gmra.mrb[140].mxu1 %vm2183_vm2, %v2125_v30 }
 0x314   : > { %v3016_v33 = vpop.f32.mrb[156].mxu0 }
 0x315   : > { %v1914_v34 = vadd.f32 %v3016_v33, %v3678_v32  ;;  %v1905_v23 = vpop.f32.mrb[157].mxu0 }
 0x316   : > { %v1906_v35 = vadd.f32 %v3678_v32, %v1905_v23  ;;  %v3017_v36 = vpop.f32.mrb[158].mxu0 }
 0x317   : > { %v1917_v37 = vadd.f32 %v3017_v36, %v3678_v32  ;;  %v1908_v38 = vpop.f32.mrb[159].mxu0  ;;  %v2078_v40 = vmax.f32 %v1914_v34, 0.0 }
 0x318   : > { %v1909_v39 = vadd.f32 %v3678_v32, %v1908_v38  ;;  %v2076_v42 = vmax.f32 %v1906_v35, 0.0 }
 0x319   : > { %v2079_v41 = vmax.f32 %v1917_v37, 0.0 }
 0x31a   : > { %v2077_v43 = vmax.f32 %v1909_v39, 0.0 }
 0x31b   : > { %v2127_v44 = vpack.c.bf16 %v2079_v41, %v2078_v40 }
 0x31c   : > { %v2126_v45 = vpack.c.bf16 %v2077_v43, %v2076_v42 }
 0x31e   : > { %3086 = vmatprep.mubr.msk.bf16.mxu1 %vm2183_vm2, %v2126_v45 }
 0x31f   : > { %3087 = vmatmul.mubr.msk.bf16.gmra.mrb[144].mxu1 %vm2183_vm2, %v2127_v44 }
 0x324   : > { %v3020_v46 = vpop.f32.mrb[160].mxu0 }
 0x325   : > { %v1930_v47 = vadd.f32 %v3020_v46, %v3678_v32  ;;  %v1921_v48 = vpop.f32.mrb[161].mxu0 }
 0x326   : > { %v1922_v49 = vadd.f32 %v3678_v32, %v1921_v48  ;;  %v3021_v50 = vpop.f32.mrb[162].mxu0 }
 0x327   : > { %v1933_v51 = vadd.f32 %v3021_v50, %v3678_v32  ;;  %v1924_v52 = vpop.f32.mrb[163].mxu0  ;;  %v2082_v56 = vmax.f32 %v1930_v47, 0.0 }
 0x328   : > { %v1925_v55 = vadd.f32 %v3678_v32, %v1924_v52  ;;  %v2080_v54 = vmax.f32 %v1922_v49, 0.0 }
 0x329   : > { %v2083_v53 = vmax.f32 %v1933_v51, 0.0 }
 0x32a   : > { %v2081_v57 = vmax.f32 %v1925_v55, 0.0 }
 0x32b   : > { %v2129_v58 = vpack.c.bf16 %v2083_v53, %v2082_v56 }
 0x32c   : > { %v2128_v59 = vpack.c.bf16 %v2081_v57, %v2080_v54 }
 0x32e   : > { %3090 = vmatprep.mubr.msk.bf16.mxu1 %vm2183_vm2, %v2128_v59 }
 0x32f   : > { %3091 = vmatmul.mubr.msk.bf16.gmra.mrb[148].mxu1 %vm2183_vm2, %v2129_v58 }
 0x334   : > { %v3024_v60 = vpop.f32.mrb[164].mxu0 }
 0x335   : > { %v1946_v61 = vadd.f32 %v3024_v60, %v3678_v32  ;;  %v1937_v62 = vpop.f32.mrb[165].mxu0 }
 0x336   : > { %v1938_v63 = vadd.f32 %v3678_v32, %v1937_v62  ;;  %v3025_v0 = vpop.f32.mrb[166].mxu0 }
 0x337   : > { %v1949_v1 = vadd.f32 %v3025_v0, %v3678_v32  ;;  %v1940_v2 = vpop.f32.mrb[167].mxu0  ;;  %v2086_v4 = vmax.f32 %v1946_v61, 0.0 }
 0x338   : > { %v1941_v3 = vadd.f32 %v3678_v32, %v1940_v2  ;;  %v2084_v6 = vmax.f32 %v1938_v63, 0.0 }
 0x339   : > { %v2087_v5 = vmax.f32 %v1949_v1, 0.0 }
 0x33a   : > { %v2085_v7 = vmax.f32 %v1941_v3, 0.0 }
 0x33b   : > { %v2131_v8 = vpack.c.bf16 %v2087_v5, %v2086_v4 }
 0x33c   : > { %v2130_v9 = vpack.c.bf16 %v2085_v7, %v2084_v6 }
 0x33e   : > { %3094 = vmatprep.mubr.msk.bf16.mxu1 %vm2183_vm2, %v2130_v9 }
 0x33f   : > { %3095 = vmatmul.mubr.msk.bf16.gmra.mrb[152].mxu1 %vm2183_vm2, %v2131_v8 }
 0x344   : > { %v3028_v10 = vpop.f32.mrb[168].mxu0 }
 0x345   : > { %v1962_v11 = vadd.f32 %v3028_v10, %v3678_v32  ;;  %v1953_v12 = vpop.f32.mrb[169].mxu0 }
 0x346   : > { %v1954_v13 = vadd.f32 %v3678_v32, %v1953_v12  ;;  %v3029_v14 = vpop.f32.mrb[170].mxu0 }
 0x347   : > { %v1965_v15 = vadd.f32 %v3029_v14, %v3678_v32  ;;  %v1956_v16 = vpop.f32.mrb[171].mxu0  ;;  %v2090_v17 = vmax.f32 %v1962_v11, 0.0 }
 0x348   : > { %v1957_v18 = vadd.f32 %v3678_v32, %v1956_v16  ;;  %v2088_v20 = vmax.f32 %v1954_v13, 0.0 }
 0x349   : > { %v2091_v19 = vmax.f32 %v1965_v15, 0.0 }
 0x34a   : > { %v2089_v21 = vmax.f32 %v1957_v18, 0.0 }
 0x34b   : > { %v2133_v22 = vpack.c.bf16 %v2091_v19, %v2090_v17 }
 0x34c   : > { %v2132_v24 = vpack.c.bf16 %v2089_v21, %v2088_v20 }
 0x34e   : > { %3098 = vmatprep.mubr.msk.bf16.mxu1 %vm2183_vm2, %v2132_v24 }
 0x34f   : > { %3099 = vmatmul.mubr.msk.bf16.gmra.mrb[156].mxu1 %vm2183_vm2, %v2133_v22 }
 0x354   : > { %v3032_v25 = vpop.f32.mrb[172].mxu0 }
 0x355   : > { %v1978_v26 = vadd.f32 %v3032_v25, %v3678_v32  ;;  %v1969_v27 = vpop.f32.mrb[173].mxu0 }
 0x356   : > { %v1970_v28 = vadd.f32 %v3678_v32, %v1969_v27  ;;  %v3033_v29 = vpop.f32.mrb[174].mxu0 }
 0x357   : > { %v1981_v30 = vadd.f32 %v3033_v29, %v3678_v32  ;;  %v1972_v31 = vpop.f32.mrb[175].mxu0  ;;  %v2094_v34 = vmax.f32 %v1978_v26, 0.0 }
 0x358   : > { %v1973_v33 = vadd.f32 %v3678_v32, %v1972_v31  ;;  %v2092_v35 = vmax.f32 %v1970_v28, 0.0 }
 0x359   : > { %v2095_v23 = vmax.f32 %v1981_v30, 0.0  ;;  %v3785_v30 = vld [vmem:[%s3998_s8] ss:$0 sm:$0xff] }
 0x35a   : > { %v2093_v36 = vmax.f32 %v1973_v33, 0.0 }
 0x35b   : > { %v2135_v37 = vpack.c.bf16 %v2095_v23, %v2094_v34 }
 0x35c   : > { %v2134_v38 = vpack.c.bf16 %v2093_v36, %v2092_v35 }
 0x35e   : > { %3102 = vmatprep.mubr.msk.bf16.mxu1 %vm2183_vm2, %v2134_v38 }
 0x35f   : > { %3103 = vmatmul.mubr.msk.bf16.gmra.mrb[160].mxu1 %vm2183_vm2, %v2135_v37 }
 0x364   : > { %v3036_v39 = vpop.f32.mrb[176].mxu0 }
 0x365   : > { %v1994_v40 = vadd.f32 %v3036_v39, %v3678_v32  ;;  %v1985_v41 = vpop.f32.mrb[177].mxu0 }
 0x366   : > { %v1986_v42 = vadd.f32 %v3678_v32, %v1985_v41  ;;  %v3037_v43 = vpop.f32.mrb[178].mxu0 }
 0x367   : > { %v1997_v44 = vadd.f32 %v3037_v43, %v3678_v32  ;;  %v1988_v45 = vpop.f32.mrb[179].mxu0  ;;  %v2098_v47 = vmax.f32 %v1994_v40, 0.0 }
 0x368   : > { %v1989_v46 = vadd.f32 %v3678_v32, %v1988_v45  ;;  %v2096_v49 = vmax.f32 %v1986_v42, 0.0 }
 0x369   : > { %v2099_v48 = vmax.f32 %v1997_v44, 0.0 }
 0x36a   : > { %v2097_v50 = vmax.f32 %v1989_v46, 0.0 }
 0x36b   : > { %v2137_v51 = vpack.c.bf16 %v2099_v48, %v2098_v47 }
 0x36c   : > { %v2136_v52 = vpack.c.bf16 %v2097_v50, %v2096_v49 }
 0x36e   : > { %3106 = vmatprep.mubr.msk.bf16.mxu1 %vm2183_vm2, %v2136_v52 }
 0x36f   : > { %3107 = vmatmul.mubr.msk.bf16.gmra.mrb[164].mxu1 %vm2183_vm2, %v2137_v51 }
 0x374   : > { %v3040_v55 = vpop.f32.mrb[180].mxu0 }
 0x375   : > { %v2010_v56 = vadd.f32 %v3040_v55, %v3678_v32  ;;  %v2001_v53 = vpop.f32.mrb[181].mxu0 }
 0x376   : > { %v2002_v54 = vadd.f32 %v3678_v32, %v2001_v53  ;;  %v3041_v57 = vpop.f32.mrb[182].mxu0 }
 0x377   : > { %v2013_v58 = vadd.f32 %v3041_v57, %v3678_v32  ;;  %v2004_v59 = vpop.f32.mrb[183].mxu0  ;;  %v2102_v61 = vmax.f32 %v2010_v56, 0.0 }
 0x378   : > { %v2005_v60 = vadd.f32 %v3678_v32, %v2004_v59  ;;  %v2100_v63 = vmax.f32 %v2002_v54, 0.0 }
 0x379   : > { %v2103_v62 = vmax.f32 %v2013_v58, 0.0 }
 0x37a   : > { %v2101_v0 = vmax.f32 %v2005_v60, 0.0 }
 0x37b   : > { %v2139_v1 = vpack.c.bf16 %v2103_v62, %v2102_v61 }
 0x37c   : > { %v2138_v2 = vpack.c.bf16 %v2101_v0, %v2100_v63 }
 0x37e   : > { %3110 = vmatprep.mubr.msk.bf16.mxu1 %vm2183_vm2, %v2138_v2 }
 0x37f   : > { %3111 = vmatmul.mubr.msk.bf16.gmra.mrb[168].mxu1 %vm2183_vm2, %v2139_v1 }
 0x384   : > { %v3044_v3 = vpop.f32.mrb[184].mxu0 }
 0x385   : > { %v2026_v4 = vadd.f32 %v3044_v3, %v3678_v32  ;;  %v2017_v5 = vpop.f32.mrb[185].mxu0 }
 0x386   : > { %v2018_v6 = vadd.f32 %v3678_v32, %v2017_v5  ;;  %v3045_v7 = vpop.f32.mrb[186].mxu0 }
 0x387   : > { %v2029_v8 = vadd.f32 %v3045_v7, %v3678_v32  ;;  %v2020_v9 = vpop.f32.mrb[187].mxu0  ;;  %v2106_v11 = vmax.f32 %v2026_v4, 0.0 }
 0x388   : > { %v2021_v10 = vadd.f32 %v3678_v32, %v2020_v9  ;;  %v2104_v13 = vmax.f32 %v2018_v6, 0.0 }
 0x389   : > { %v2107_v12 = vmax.f32 %v2029_v8, 0.0 }
 0x38a   : > { %v2105_v14 = vmax.f32 %v2021_v10, 0.0 }
 0x38b   : > { %v2141_v15 = vpack.c.bf16 %v2107_v12, %v2106_v11 }
 0x38c   : > { %v2140_v16 = vpack.c.bf16 %v2105_v14, %v2104_v13 }
 0x38e   : > { %3114 = vmatprep.mubr.msk.bf16.mxu1 %vm2183_vm2, %v2140_v16 }
 0x38f   : > { %3115 = vmatmul.mubr.msk.bf16.gmra.mrb[172].mxu1 %vm2183_vm2, %v2141_v15 }
 0x394   : > { %v3048_v18 = vpop.f32.mrb[188].mxu0 }
 0x395   : > { %v2042_v17 = vadd.f32 %v3048_v18, %v3678_v32  ;;  %v2033_v19 = vpop.f32.mrb[189].mxu0 }
 0x396   : > { %v2034_v20 = vadd.f32 %v3678_v32, %v2033_v19  ;;  %v3049_v21 = vpop.f32.mrb[190].mxu0 }
 0x397   : > { %v2045_v22 = vadd.f32 %v3049_v21, %v3678_v32  ;;  %v2036_v24 = vpop.f32.mrb[191].mxu0  ;;  %v2110_v26 = vmax.f32 %v2042_v17, 0.0 }
 0x398   : > { %v2037_v25 = vadd.f32 %v3678_v32, %v2036_v24  ;;  %v2108_v28 = vmax.f32 %v2034_v20, 0.0 }
 0x399   : > { %v2111_v27 = vmax.f32 %v2045_v22, 0.0 }
 0x39a   : > { %v2109_v29 = vmax.f32 %v2037_v25, 0.0 }
 0x39b   : > { %v2143_v31 = vpack.c.bf16 %v2111_v27, %v2110_v26 }
 0x39c   : > { %v2142_v33 = vpack.c.bf16 %v2109_v29, %v2108_v28  ;;  %v3060_v34 = vpop.f32.mrb[192].mxu0 }
 0x39d   : > { %v2323_v23 = vadd.f32 %v3060_v34, %v3785_v30  ;;  %v2314_v35 = vpop.f32.mrb[193].mxu0 }
 0x39e   : > { %v2315_v32 = vadd.f32 %v3785_v30, %v2314_v35  ;;  %v3061_v36 = vpop.f32.mrb[194].mxu0  ;;  %3118 = vmatprep.mubr.msk.bf16.mxu1 %vm2183_vm2, %v2142_v33 }
 0x39f   : > { %v2571_v37 = vmax.f32 %v2323_v23, 0.0  ;;  %v2326_v38 = vadd.f32 %v3061_v36, %v3785_v30  ;;  %v2317_v39 = vpop.f32.mrb[195].mxu0  ;;  %3119 = vmatmul.mubr.msk.bf16.gmra.mrb[176].mxu1 %vm2183_vm2, %v2143_v31 }
 0x3a0   : > { %v2569_v40 = vmax.f32 %v2315_v32, 0.0  ;;  %v2318_v41 = vadd.f32 %v3785_v30, %v2317_v39 }
 0x3a1   : > { %2635 = vst.msk [vmem:[%s3792_s11 + $0x10] sm:$0xff] %vm2183_vm2, %v2571_v37  ;;  %v2572_v42 = vmax.f32 %v2326_v38, 0.0 }
 0x3a2   : > { %2633 = vst.msk [vmem:[%s3792_s11] sm:$0xff] %vm2183_vm2, %v2569_v40  ;;  %v2570_v43 = vmax.f32 %v2318_v41, 0.0 }
 0x3a3   : > { %2636 = vst.msk [vmem:[%s3792_s11 + $0x18] sm:$0xff] %vm2183_vm2, %v2572_v42 }
 0x3a4   : > { %2634 = vst.msk [vmem:[%s3792_s11 + $0x8] sm:$0xff] %vm2183_vm2, %v2570_v43  ;;  %v3064_v44 = vpop.f32.mrb[196].mxu0 }
 0x3a5   : > { %v2339_v45 = vadd.f32 %v3064_v44, %v3785_v30  ;;  %v2330_v46 = vpop.f32.mrb[197].mxu0 }
 0x3a6   : > { %v2331_v47 = vadd.f32 %v3785_v30, %v2330_v46  ;;  %v3065_v48 = vpop.f32.mrb[198].mxu0 }
 0x3a7   : > { %v2575_v49 = vmax.f32 %v2339_v45, 0.0  ;;  %v2342_v50 = vadd.f32 %v3065_v48, %v3785_v30  ;;  %v2333_v51 = vpop.f32.mrb[199].mxu0 }
 0x3a8   : > { %v2573_v52 = vmax.f32 %v2331_v47, 0.0  ;;  %v2334_v55 = vadd.f32 %v3785_v30, %v2333_v51 }
 0x3a9   : > { %2639 = vst.msk [vmem:[%s3792_s11 + $0x30] sm:$0xff] %vm2183_vm2, %v2575_v49  ;;  %v2576_v56 = vmax.f32 %v2342_v50, 0.0 }
 0x3aa   : > { %2637 = vst.msk [vmem:[%s3792_s11 + $0x20] sm:$0xff] %vm2183_vm2, %v2573_v52  ;;  %v2574_v53 = vmax.f32 %v2334_v55, 0.0 }
 0x3ab   : > { %2640 = vst.msk [vmem:[%s3792_s11 + $0x38] sm:$0xff] %vm2183_vm2, %v2576_v56 }
 0x3ac   : > { %2638 = vst.msk [vmem:[%s3792_s11 + $0x28] sm:$0xff] %vm2183_vm2, %v2574_v53  ;;  %v3068_v54 = vpop.f32.mrb[200].mxu0 }
 0x3ad   : > { %v2355_v57 = vadd.f32 %v3068_v54, %v3785_v30  ;;  %v2346_v58 = vpop.f32.mrb[201].mxu0 }
 0x3ae   : > { %v2347_v59 = vadd.f32 %v3785_v30, %v2346_v58  ;;  %v3069_v60 = vpop.f32.mrb[202].mxu0 }
 0x3af   : > { %v2579_v61 = vmax.f32 %v2355_v57, 0.0  ;;  %v2358_v62 = vadd.f32 %v3069_v60, %v3785_v30  ;;  %v2349_v63 = vpop.f32.mrb[203].mxu0 }
 0x3b0   : > { %v2577_v0 = vmax.f32 %v2347_v59, 0.0  ;;  %v2350_v1 = vadd.f32 %v3785_v30, %v2349_v63 }
 0x3b1   : > { %2643 = vst.msk [vmem:[%s3792_s11 + $0x50] sm:$0xff] %vm2183_vm2, %v2579_v61  ;;  %v2580_v2 = vmax.f32 %v2358_v62, 0.0 }
 0x3b2   : > { %2641 = vst.msk [vmem:[%s3792_s11 + $0x40] sm:$0xff] %vm2183_vm2, %v2577_v0  ;;  %v2578_v3 = vmax.f32 %v2350_v1, 0.0  ;;  %v3072_v4 = vpop.f32.mrb[128].mxu1 }
 0x3b3   : > { %2644 = vst.msk [vmem:[%s3792_s11 + $0x58] sm:$0xff] %vm2183_vm2, %v2580_v2  ;;  %v2371_v5 = vadd.f32 %v3072_v4, %v3785_v30  ;;  %v2362_v6 = vpop.f32.mrb[129].mxu1 }
 0x3b4   : > { %2642 = vst.msk [vmem:[%s3792_s11 + $0x48] sm:$0xff] %vm2183_vm2, %v2578_v3  ;;  %v2363_v7 = vadd.f32 %v3785_v30, %v2362_v6  ;;  %v3073_v8 = vpop.f32.mrb[130].mxu1 }
 0x3b5   : > { %v2583_v9 = vmax.f32 %v2371_v5, 0.0  ;;  %v2374_v10 = vadd.f32 %v3073_v8, %v3785_v30  ;;  %v2365_v11 = vpop.f32.mrb[131].mxu1 }
 0x3b6   : > { %v2581_v12 = vmax.f32 %v2363_v7, 0.0  ;;  %v2366_v13 = vadd.f32 %v3785_v30, %v2365_v11 }
 0x3b7   : > { %2647 = vst.msk [vmem:[%s3792_s11 + $0x70] sm:$0xff] %vm2183_vm2, %v2583_v9  ;;  %v2584_v14 = vmax.f32 %v2374_v10, 0.0 }
 0x3b8   : > { %2645 = vst.msk [vmem:[%s3792_s11 + $0x60] sm:$0xff] %vm2183_vm2, %v2581_v12  ;;  %v2582_v15 = vmax.f32 %v2366_v13, 0.0 }
 0x3b9   : > { %2648 = vst.msk [vmem:[%s3792_s11 + $0x78] sm:$0xff] %vm2183_vm2, %v2584_v14 }
 0x3ba   : > { %2646 = vst.msk [vmem:[%s3792_s11 + $0x68] sm:$0xff] %vm2183_vm2, %v2582_v15 }
 0x3c2   : > { %v3076_v16 = vpop.f32.mrb[132].mxu1 }
 0x3c3   : > { %v2387_v18 = vadd.f32 %v3076_v16, %v3785_v30  ;;  %v2378_v17 = vpop.f32.mrb[133].mxu1 }
 0x3c4   : > { %v2379_v19 = vadd.f32 %v3785_v30, %v2378_v17  ;;  %v3077_v20 = vpop.f32.mrb[134].mxu1 }
 0x3c5   : > { %v2587_v21 = vmax.f32 %v2387_v18, 0.0  ;;  %v2390_v22 = vadd.f32 %v3077_v20, %v3785_v30  ;;  %v2381_v24 = vpop.f32.mrb[135].mxu1 }
 0x3c6   : > { %v2585_v25 = vmax.f32 %v2379_v19, 0.0  ;;  %v2382_v26 = vadd.f32 %v3785_v30, %v2381_v24 }
 0x3c7   : > { %2651 = vst.msk [vmem:[%s3792_s11 + $0x90] sm:$0xff] %vm2183_vm2, %v2587_v21  ;;  %v2588_v27 = vmax.f32 %v2390_v22, 0.0 }
 0x3c8   : > { %2649 = vst.msk [vmem:[%s3792_s11 + $0x80] sm:$0xff] %vm2183_vm2, %v2585_v25  ;;  %v2586_v28 = vmax.f32 %v2382_v26, 0.0 }
 0x3c9   : > { %2652 = vst.msk [vmem:[%s3792_s11 + $0x98] sm:$0xff] %vm2183_vm2, %v2588_v27 }
 0x3ca   : > { %2650 = vst.msk [vmem:[%s3792_s11 + $0x88] sm:$0xff] %vm2183_vm2, %v2586_v28 }
 0x3d2   : > { %v3080_v29 = vpop.f32.mrb[136].mxu1 }
 0x3d3   : > { %v2403_v31 = vadd.f32 %v3080_v29, %v3785_v30  ;;  %v2394_v33 = vpop.f32.mrb[137].mxu1 }
 0x3d4   : > { %v2395_v34 = vadd.f32 %v3785_v30, %v2394_v33  ;;  %v3081_v23 = vpop.f32.mrb[138].mxu1 }
 0x3d5   : > { %v2591_v35 = vmax.f32 %v2403_v31, 0.0  ;;  %v2406_v32 = vadd.f32 %v3081_v23, %v3785_v30  ;;  %v2397_v36 = vpop.f32.mrb[139].mxu1 }
 0x3d6   : > { %v2589_v37 = vmax.f32 %v2395_v34, 0.0  ;;  %v2398_v38 = vadd.f32 %v3785_v30, %v2397_v36 }
 0x3d7   : > { %2655 = vst.msk [vmem:[%s3792_s11 + $0xb0] sm:$0xff] %vm2183_vm2, %v2591_v35  ;;  %v2592_v39 = vmax.f32 %v2406_v32, 0.0 }
 0x3d8   : > { %2653 = vst.msk [vmem:[%s3792_s11 + $0xa0] sm:$0xff] %vm2183_vm2, %v2589_v37  ;;  %v2590_v40 = vmax.f32 %v2398_v38, 0.0 }
 0x3d9   : > { %2656 = vst.msk [vmem:[%s3792_s11 + $0xb8] sm:$0xff] %vm2183_vm2, %v2592_v39 }
 0x3da   : > { %2654 = vst.msk [vmem:[%s3792_s11 + $0xa8] sm:$0xff] %vm2183_vm2, %v2590_v40 }
 0x3e2   : > { %v3084_v41 = vpop.f32.mrb[140].mxu1 }
 0x3e3   : > { %v2419_v42 = vadd.f32 %v3084_v41, %v3785_v30  ;;  %v2410_v43 = vpop.f32.mrb[141].mxu1 }
 0x3e4   : > { %v2411_v44 = vadd.f32 %v3785_v30, %v2410_v43  ;;  %v3085_v45 = vpop.f32.mrb[142].mxu1 }
 0x3e5   : > { %v2595_v46 = vmax.f32 %v2419_v42, 0.0  ;;  %v2422_v47 = vadd.f32 %v3085_v45, %v3785_v30  ;;  %v2413_v48 = vpop.f32.mrb[143].mxu1 }
 0x3e6   : > { %v2593_v49 = vmax.f32 %v2411_v44, 0.0  ;;  %v2414_v50 = vadd.f32 %v3785_v30, %v2413_v48 }
 0x3e7   : > { %2659 = vst.msk [vmem:[%s3792_s11 + $0xd0] sm:$0xff] %vm2183_vm2, %v2595_v46  ;;  %v2596_v51 = vmax.f32 %v2422_v47, 0.0 }
 0x3e8   : > { %2657 = vst.msk [vmem:[%s3792_s11 + $0xc0] sm:$0xff] %vm2183_vm2, %v2593_v49  ;;  %v2594_v52 = vmax.f32 %v2414_v50, 0.0 }
 0x3e9   : > { %2660 = vst.msk [vmem:[%s3792_s11 + $0xd8] sm:$0xff] %vm2183_vm2, %v2596_v51 }
 0x3ea   : > { %2658 = vst.msk [vmem:[%s3792_s11 + $0xc8] sm:$0xff] %vm2183_vm2, %v2594_v52 }
 0x3f2   : > { %v3088_v55 = vpop.f32.mrb[144].mxu1 }
 0x3f3   : > { %v2435_v56 = vadd.f32 %v3088_v55, %v3785_v30  ;;  %v2426_v53 = vpop.f32.mrb[145].mxu1 }
 0x3f4   : > { %v2427_v54 = vadd.f32 %v3785_v30, %v2426_v53  ;;  %v3089_v57 = vpop.f32.mrb[146].mxu1 }
 0x3f5   : > { %v2599_v58 = vmax.f32 %v2435_v56, 0.0  ;;  %v2438_v59 = vadd.f32 %v3089_v57, %v3785_v30  ;;  %v2429_v60 = vpop.f32.mrb[147].mxu1 }
 0x3f6   : > { %v2597_v61 = vmax.f32 %v2427_v54, 0.0  ;;  %v2430_v62 = vadd.f32 %v3785_v30, %v2429_v60 }
 0x3f7   : > { %2663 = vst.msk [vmem:[%s3792_s11 + $0xf0] sm:$0xff] %vm2183_vm2, %v2599_v58  ;;  %v2600_v63 = vmax.f32 %v2438_v59, 0.0 }
 0x3f8   : > { %2661 = vst.msk [vmem:[%s3792_s11 + $0xe0] sm:$0xff] %vm2183_vm2, %v2597_v61  ;;  %v2598_v0 = vmax.f32 %v2430_v62, 0.0 }
 0x3f9   : > { %2664 = vst.msk [vmem:[%s3792_s11 + $0xf8] sm:$0xff] %vm2183_vm2, %v2600_v63 }
 0x3fa   : > { %2662 = vst.msk [vmem:[%s3792_s11 + $0xe8] sm:$0xff] %vm2183_vm2, %v2598_v0 }
 0x402   : > { %v3092_v1 = vpop.f32.mrb[148].mxu1 }
 0x403   : > { %v2451_v2 = vadd.f32 %v3092_v1, %v3785_v30  ;;  %v2442_v3 = vpop.f32.mrb[149].mxu1 }
 0x404   : > { %v2443_v4 = vadd.f32 %v3785_v30, %v2442_v3  ;;  %v3093_v5 = vpop.f32.mrb[150].mxu1 }
 0x405   : > { %v2603_v6 = vmax.f32 %v2451_v2, 0.0  ;;  %v2454_v7 = vadd.f32 %v3093_v5, %v3785_v30  ;;  %v2445_v8 = vpop.f32.mrb[151].mxu1 }
 0x406   : > { %v2601_v9 = vmax.f32 %v2443_v4, 0.0  ;;  %v2446_v10 = vadd.f32 %v3785_v30, %v2445_v8 }
 0x407   : > { %2667 = vst.msk [vmem:[%s3792_s11 + $0x110] sm:$0xff] %vm2183_vm2, %v2603_v6  ;;  %v2604_v11 = vmax.f32 %v2454_v7, 0.0 }
 0x408   : > { %2665 = vst.msk [vmem:[%s3792_s11 + $0x100] sm:$0xff] %vm2183_vm2, %v2601_v9  ;;  %v2602_v12 = vmax.f32 %v2446_v10, 0.0 }
 0x409   : > { %2668 = vst.msk [vmem:[%s3792_s11 + $0x118] sm:$0xff] %vm2183_vm2, %v2604_v11 }
 0x40a   : > { %2666 = vst.msk [vmem:[%s3792_s11 + $0x108] sm:$0xff] %vm2183_vm2, %v2602_v12 }
 0x412   : > { %v3096_v13 = vpop.f32.mrb[152].mxu1 }
 0x413   : > { %v2467_v14 = vadd.f32 %v3096_v13, %v3785_v30  ;;  %v2458_v15 = vpop.f32.mrb[153].mxu1 }
 0x414   : > { %v2459_v16 = vadd.f32 %v3785_v30, %v2458_v15  ;;  %v3097_v18 = vpop.f32.mrb[154].mxu1 }
 0x415   : > { %v2607_v17 = vmax.f32 %v2467_v14, 0.0  ;;  %v2470_v19 = vadd.f32 %v3097_v18, %v3785_v30  ;;  %v2461_v20 = vpop.f32.mrb[155].mxu1 }
 0x416   : > { %v2605_v21 = vmax.f32 %v2459_v16, 0.0  ;;  %v2462_v22 = vadd.f32 %v3785_v30, %v2461_v20 }
 0x417   : > { %2671 = vst.msk [vmem:[%s3792_s11 + $0x130] sm:$0xff] %vm2183_vm2, %v2607_v17  ;;  %v2608_v24 = vmax.f32 %v2470_v19, 0.0 }
 0x418   : > { %2669 = vst.msk [vmem:[%s3792_s11 + $0x120] sm:$0xff] %vm2183_vm2, %v2605_v21  ;;  %v2606_v25 = vmax.f32 %v2462_v22, 0.0 }
 0x419   : > { %2672 = vst.msk [vmem:[%s3792_s11 + $0x138] sm:$0xff] %vm2183_vm2, %v2608_v24 }
 0x41a   : > { %2670 = vst.msk [vmem:[%s3792_s11 + $0x128] sm:$0xff] %vm2183_vm2, %v2606_v25 }
 0x422   : > { %v3100_v26 = vpop.f32.mrb[156].mxu1 }
 0x423   : > { %v2483_v27 = vadd.f32 %v3100_v26, %v3785_v30  ;;  %v2474_v28 = vpop.f32.mrb[157].mxu1 }
 0x424   : > { %v2475_v29 = vadd.f32 %v3785_v30, %v2474_v28  ;;  %v3101_v31 = vpop.f32.mrb[158].mxu1 }
 0x425   : > { %v2611_v33 = vmax.f32 %v2483_v27, 0.0  ;;  %v2486_v34 = vadd.f32 %v3101_v31, %v3785_v30  ;;  %v2477_v23 = vpop.f32.mrb[159].mxu1 }
 0x426   : > { %v2609_v35 = vmax.f32 %v2475_v29, 0.0  ;;  %v2478_v32 = vadd.f32 %v3785_v30, %v2477_v23 }
 0x427   : > { %2675 = vst.msk [vmem:[%s3792_s11 + $0x150] sm:$0xff] %vm2183_vm2, %v2611_v33  ;;  %v2612_v36 = vmax.f32 %v2486_v34, 0.0 }
 0x428   : > { %2673 = vst.msk [vmem:[%s3792_s11 + $0x140] sm:$0xff] %vm2183_vm2, %v2609_v35  ;;  %v2610_v37 = vmax.f32 %v2478_v32, 0.0 }
 0x429   : > { %2676 = vst.msk [vmem:[%s3792_s11 + $0x158] sm:$0xff] %vm2183_vm2, %v2612_v36 }
 0x42a   : > { %2674 = vst.msk [vmem:[%s3792_s11 + $0x148] sm:$0xff] %vm2183_vm2, %v2610_v37 }
 0x432   : > { %v3104_v38 = vpop.f32.mrb[160].mxu1 }
 0x433   : > { %v2499_v39 = vadd.f32 %v3104_v38, %v3785_v30  ;;  %v2490_v40 = vpop.f32.mrb[161].mxu1 }
 0x434   : > { %v2491_v41 = vadd.f32 %v3785_v30, %v2490_v40  ;;  %v3105_v42 = vpop.f32.mrb[162].mxu1 }
 0x435   : > { %v2615_v43 = vmax.f32 %v2499_v39, 0.0  ;;  %v2502_v44 = vadd.f32 %v3105_v42, %v3785_v30  ;;  %v2493_v45 = vpop.f32.mrb[163].mxu1 }
 0x436   : > { %v2613_v46 = vmax.f32 %v2491_v41, 0.0  ;;  %v2494_v47 = vadd.f32 %v3785_v30, %v2493_v45 }
 0x437   : > { %2679 = vst.msk [vmem:[%s3792_s11 + $0x170] sm:$0xff] %vm2183_vm2, %v2615_v43  ;;  %v2616_v48 = vmax.f32 %v2502_v44, 0.0 }
 0x438   : > { %2677 = vst.msk [vmem:[%s3792_s11 + $0x160] sm:$0xff] %vm2183_vm2, %v2613_v46  ;;  %v2614_v49 = vmax.f32 %v2494_v47, 0.0 }
 0x439   : > { %2680 = vst.msk [vmem:[%s3792_s11 + $0x178] sm:$0xff] %vm2183_vm2, %v2616_v48 }
 0x43a   : > { %2678 = vst.msk [vmem:[%s3792_s11 + $0x168] sm:$0xff] %vm2183_vm2, %v2614_v49 }
 0x442   : > { %v3108_v50 = vpop.f32.mrb[164].mxu1 }
 0x443   : > { %v2515_v51 = vadd.f32 %v3108_v50, %v3785_v30  ;;  %v2506_v52 = vpop.f32.mrb[165].mxu1 }
 0x444   : > { %v2507_v55 = vadd.f32 %v3785_v30, %v2506_v52  ;;  %v3109_v56 = vpop.f32.mrb[166].mxu1 }
 0x445   : > { %v2619_v53 = vmax.f32 %v2515_v51, 0.0  ;;  %v2518_v54 = vadd.f32 %v3109_v56, %v3785_v30  ;;  %v2509_v57 = vpop.f32.mrb[167].mxu1 }
 0x446   : > { %v2617_v58 = vmax.f32 %v2507_v55, 0.0  ;;  %v2510_v59 = vadd.f32 %v3785_v30, %v2509_v57 }
 0x447   : > { %2683 = vst.msk [vmem:[%s3792_s11 + $0x190] sm:$0xff] %vm2183_vm2, %v2619_v53  ;;  %v2620_v60 = vmax.f32 %v2518_v54, 0.0 }
 0x448   : > { %2681 = vst.msk [vmem:[%s3792_s11 + $0x180] sm:$0xff] %vm2183_vm2, %v2617_v58  ;;  %v2618_v61 = vmax.f32 %v2510_v59, 0.0 }
 0x449   : > { %2684 = vst.msk [vmem:[%s3792_s11 + $0x198] sm:$0xff] %vm2183_vm2, %v2620_v60 }
 0x44a   : > { %2682 = vst.msk [vmem:[%s3792_s11 + $0x188] sm:$0xff] %vm2183_vm2, %v2618_v61 }
 0x452   : > { %v3112_v62 = vpop.f32.mrb[168].mxu1 }
 0x453   : > { %v2531_v63 = vadd.f32 %v3112_v62, %v3785_v30  ;;  %v2522_v0 = vpop.f32.mrb[169].mxu1 }
 0x454   : > { %v2523_v1 = vadd.f32 %v3785_v30, %v2522_v0  ;;  %v3113_v2 = vpop.f32.mrb[170].mxu1 }
 0x455   : > { %v2623_v3 = vmax.f32 %v2531_v63, 0.0  ;;  %v2534_v4 = vadd.f32 %v3113_v2, %v3785_v30  ;;  %v2525_v5 = vpop.f32.mrb[171].mxu1 }
 0x456   : > { %v2621_v6 = vmax.f32 %v2523_v1, 0.0  ;;  %v2526_v7 = vadd.f32 %v3785_v30, %v2525_v5 }
 0x457   : > { %2687 = vst.msk [vmem:[%s3792_s11 + $0x1b0] sm:$0xff] %vm2183_vm2, %v2623_v3  ;;  %v2624_v8 = vmax.f32 %v2534_v4, 0.0 }
 0x458   : > { %2685 = vst.msk [vmem:[%s3792_s11 + $0x1a0] sm:$0xff] %vm2183_vm2, %v2621_v6  ;;  %v2622_v9 = vmax.f32 %v2526_v7, 0.0 }
 0x459   : > { %2688 = vst.msk [vmem:[%s3792_s11 + $0x1b8] sm:$0xff] %vm2183_vm2, %v2624_v8 }
 0x45a   : > { %2686 = vst.msk [vmem:[%s3792_s11 + $0x1a8] sm:$0xff] %vm2183_vm2, %v2622_v9 }
 0x462   : > { %v3116_v10 = vpop.f32.mrb[172].mxu1 }
 0x463   : > { %v2547_v11 = vadd.f32 %v3116_v10, %v3785_v30  ;;  %v2538_v12 = vpop.f32.mrb[173].mxu1 }
 0x464   : > { %v2539_v13 = vadd.f32 %v3785_v30, %v2538_v12  ;;  %v3117_v14 = vpop.f32.mrb[174].mxu1 }
 0x465   : > { %v2627_v15 = vmax.f32 %v2547_v11, 0.0  ;;  %v2550_v16 = vadd.f32 %v3117_v14, %v3785_v30  ;;  %v2541_v18 = vpop.f32.mrb[175].mxu1 }
 0x466   : > { %v2625_v17 = vmax.f32 %v2539_v13, 0.0  ;;  %v2542_v19 = vadd.f32 %v3785_v30, %v2541_v18 }
 0x467   : > { %2691 = vst.msk [vmem:[%s3792_s11 + $0x1d0] sm:$0xff] %vm2183_vm2, %v2627_v15  ;;  %v2628_v20 = vmax.f32 %v2550_v16, 0.0 }
 0x468   : > { %2689 = vst.msk [vmem:[%s3792_s11 + $0x1c0] sm:$0xff] %vm2183_vm2, %v2625_v17  ;;  %v2626_v21 = vmax.f32 %v2542_v19, 0.0 }
 0x469   : > { %2692 = vst.msk [vmem:[%s3792_s11 + $0x1d8] sm:$0xff] %vm2183_vm2, %v2628_v20 }
 0x46a   : > { %2690 = vst.msk [vmem:[%s3792_s11 + $0x1c8] sm:$0xff] %vm2183_vm2, %v2626_v21 }
 0x472   : > { %v3120_v22 = vpop.f32.mrb[176].mxu1 }
 0x473   : > { %v2563_v24 = vadd.f32 %v3120_v22, %v3785_v30  ;;  %v2554_v25 = vpop.f32.mrb[177].mxu1 }
 0x474   : > { %v2555_v26 = vadd.f32 %v3785_v30, %v2554_v25  ;;  %v3121_v27 = vpop.f32.mrb[178].mxu1 }
 0x475   : > { %v2631_v28 = vmax.f32 %v2563_v24, 0.0  ;;  %v2566_v29 = vadd.f32 %v3121_v27, %v3785_v30  ;;  %v2557_v31 = vpop.f32.mrb[179].mxu1 }
 0x476   : > { %v2629_v33 = vmax.f32 %v2555_v26, 0.0  ;;  %v2558_v34 = vadd.f32 %v3785_v30, %v2557_v31 }
 0x477   : > { %2695 = vst.msk [vmem:[%s3792_s11 + $0x1f0] sm:$0xff] %vm2183_vm2, %v2631_v28  ;;  %v2632_v23 = vmax.f32 %v2566_v29, 0.0 }
 0x478   : > { %2693 = vst.msk [vmem:[%s3792_s11 + $0x1e0] sm:$0xff] %vm2183_vm2, %v2629_v33  ;;  %v2630_v35 = vmax.f32 %v2558_v34, 0.0 }
 0x479   : > { %2696 = vst.msk [vmem:[%s3792_s11 + $0x1f8] sm:$0xff] %vm2183_vm2, %v2632_v23 }
 0x47a   : > { %2694 = vst.msk [vmem:[%s3792_s11 + $0x1e8] sm:$0xff] %vm2183_vm2, %v2630_v35 }
 0x47b PF: > { %s19_s30 = sadd.s32 1, %s3208_s30  }
 0x47c   : > { %p16_p4 = scmp.ge.s32.totalorder %s19_s30, 6  }
 0x47e   :  { %18 = sbr.rel (!%p16_p4) target bundleno = 1 (0x1), region = 86 }

</bundles_post_ra>
